<compile_context>
chip_gen: v7x
topology: tpu7x:2x2x1
jax: 0.10.0
libtpu: 0.0.40
codegen_flags: <defaults>
</compile_context>

<pallas_src>
import functools

import jax
import jax.numpy as jnp
from jax import lax
from jax.experimental import pallas as pl
from jax.experimental.pallas import tpu as pltpu


# ---------------------------------------------------------------------------
# Fused: 1x1 qkv conv  +  3x3 depthwise conv (stride 1, padding 1)
# Layout: (B, C, L) with L = H*W on the lane axis.
# Grid: (B, L // lane_tile); each step produces whole output rows of one image.
# ---------------------------------------------------------------------------
def _fused_qkv_dwconv_kernel(*refs, img_w, lane_tile, num_tiles, halo_w):
    if num_tiles > 1:
        x_ref, xp_ref, xn_ref, wpw_ref, bpw_ref, wdw_ref, bdw_ref, o_ref = refs
    else:
        x_ref, wpw_ref, bpw_ref, wdw_ref, bdw_ref, o_ref = refs

    t = pl.program_id(1)
    W = img_w
    lt = lane_tile

    wpw = wpw_ref[...]                       # (3C, C)
    bpw = bpw_ref[...]                       # (3C, 1)
    c3 = wpw.shape[0]

    # 1x1 conv for this tile's rows (lane-dense MXU matmul, N = lane_tile).
    y_mid = jnp.dot(wpw, x_ref[0], preferred_element_type=jnp.float32) + bpw

    # Row halo: last row of the previous tile / first row of the next tile.
    # Zeroed at the image border (dwconv zero-pads its input, NOT conv(0)=bias).
    if num_tiles > 1:
        x_prev = xp_ref[0][:, halo_w - W:]               # (C, W)
        x_next = xn_ref[0][:, :W]                        # (C, W)
        valid_prev = jnp.where(t > 0, 1.0, 0.0)
        valid_next = jnp.where(t < num_tiles - 1, 1.0, 0.0)
        y_prev = (jnp.dot(wpw, x_prev, preferred_element_type=jnp.float32)
                  + bpw) * valid_prev
        y_next = (jnp.dot(wpw, x_next, preferred_element_type=jnp.float32)
                  + bpw) * valid_next
    else:
        y_prev = jnp.zeros((c3, W), jnp.float32)
        y_next = jnp.zeros((c3, W), jnp.float32)

    # Extended slab: [zero col | prev row | tile rows | next row | zero col]
    zcol = jnp.zeros((c3, 1), jnp.float32)
    ye = jnp.concatenate([zcol, y_prev, y_mid, y_next, zcol], axis=1)

    # Column validity (a flattened-L shift of +-1 wraps across row ends).
    col = lax.broadcasted_iota(jnp.int32, (1, lt), 1) % W
    m_left = (col >= 1).astype(jnp.float32)              # for dx == 0 taps
    m_right = (col <= W - 2).astype(jnp.float32)         # for dx == 2 taps

    wdw = wdw_ref[...]                                   # (3C, 9)
    base = W + 1
    acc = jnp.zeros((c3, lt), jnp.float32)
    for dy in range(3):
        for dx in range(3):
            s = (dy - 1) * W + (dx - 1)
            tap = ye[:, base + s: base + s + lt]          # static slice
            contrib = tap * wdw[:, dy * 3 + dx: dy * 3 + dx + 1]
            if dx == 0:
                contrib = contrib * m_left
            elif dx == 2:
                contrib = contrib * m_right
            acc = acc + contrib

    o_ref[0] = (acc + bdw_ref[...]).astype(o_ref.dtype)


def _choose_lane_tile(H, W, max_lanes=512):
    """Largest whole-row tile <= max_lanes lanes that is a multiple of 128."""
    cands = [r * W for r in range(1, H + 1)
             if H % r == 0 and (r * W) % 128 == 0 and r * W <= max_lanes]
    return max(cands) if cands else H * W


def _choose_halo_width(lane_tile, img_w):
    """Smallest multiple of 128 that divides lane_tile and is >= img_w."""
    k = lane_tile // 128
    for d in range(1, k + 1):
        if k % d == 0 and 128 * d >= img_w:
            return 128 * d
    return lane_tile


def fused_qkv_dwconv(x_bcl, w_pw, b_pw, w_dw9, b_dw, img_w, lane_tile):
    B, C, L = x_bcl.shape
    C3 = w_pw.shape[0]
    n_t = L // lane_tile
    assert n_t * lane_tile == L

    const = lambda b, t: (0, 0)
    in_specs = [pl.BlockSpec((1, C, lane_tile), lambda b, t: (b, 0, t))]
    args = [x_bcl]
    halo_w = lane_tile
    if n_t > 1:
        halo_w = _choose_halo_width(lane_tile, img_w)
        tpb = lane_tile // halo_w          # halo blocks per tile
        nhb = L // halo_w                  # total halo blocks
        in_specs += [
            pl.BlockSpec((1, C, halo_w),
                         lambda b, t: (b, 0, jnp.maximum(t * tpb - 1, 0))),
            pl.BlockSpec((1, C, halo_w),
                         lambda b, t: (b, 0, jnp.minimum((t + 1) * tpb, nhb - 1))),
        ]
        args += [x_bcl, x_bcl]
    in_specs += [
        pl.BlockSpec((C3, C), const),
        pl.BlockSpec((C3, 1), const),
        pl.BlockSpec((C3, 9), const),
        pl.BlockSpec((C3, 1), const),
    ]
    args += [w_pw, b_pw, w_dw9, b_dw]

    kernel = functools.partial(_fused_qkv_dwconv_kernel, img_w=img_w,
                               lane_tile=lane_tile, num_tiles=n_t,
                               halo_w=halo_w)
    return pl.pallas_call(
        kernel,
        out_shape=jax.ShapeDtypeStruct((B, C3, L), jnp.float32),
        grid=(B, n_t),
        in_specs=in_specs,
        out_specs=pl.BlockSpec((1, C3, lane_tile), lambda b, t: (b, 0, t)),
        compiler_params=pltpu.CompilerParams(
            dimension_semantics=("parallel", "parallel")),
    )(*args)


# ---------------------------------------------------------------------------
# Transposed (channel) attention -- all heads of one batch element per step.
# q/k/v are sublane slices of the fused conv output, no transposes needed.
# ---------------------------------------------------------------------------
def _attn_kernel(qkv_ref, ca_ref, temp_ref, mask_ref, o_ref, *, dim):
    C = dim
    q = qkv_ref[0, 0:C, :].astype(jnp.float32)                 # (C, L)
    k = qkv_ref[0, C:2 * C, :].astype(jnp.float32)
    v = qkv_ref[0, 2 * C:3 * C, :].astype(jnp.float32) * ca_ref[0]

    # torch.nn.functional.normalize: x / max(||x||_2, 1e-12)
    eps2 = 1e-24
    qn = q * lax.rsqrt(jnp.maximum(jnp.sum(q * q, axis=-1, keepdims=True), eps2))
    kn = k * lax.rsqrt(jnp.maximum(jnp.sum(k * k, axis=-1, keepdims=True), eps2))

    # All heads at once: full (C, C) gram; out-of-head entries masked to a
    # large negative so the row softmax reduces to the per-head softmax.
    gram = lax.dot_general(qn, kn, (((1,), (1,)), ((), ())),
                           preferred_element_type=jnp.float32)   # (C, C)
    scores = gram * temp_ref[...] + mask_ref[...]
    scores = scores - jnp.max(scores, axis=-1, keepdims=True)
    p = jnp.exp(scores)
    attn = p * pl.reciprocal(jnp.sum(p, axis=-1, keepdims=True), approx=True)
    out = jnp.dot(attn, v, preferred_element_type=jnp.float32)   # (C, L)
    o_ref[0] = out.astype(o_ref.dtype)


def head_attention(qkv_bcl, ca, temp_per_ch, mask_bias):
    B, C3, L = qkv_bcl.shape
    C = C3 // 3
    kernel = functools.partial(_attn_kernel, dim=C)
    return pl.pallas_call(
        kernel,
        out_shape=jax.ShapeDtypeStruct((B, C, L), jnp.float32),
        grid=(B,),
        in_specs=[
            pl.BlockSpec((1, C3, L), lambda b: (b, 0, 0)),
            pl.BlockSpec((1, C, 1), lambda b: (b, 0, 0)),
            pl.BlockSpec((C, 1), lambda b: (0, 0)),
            pl.BlockSpec((C, C), lambda b: (0, 0)),
        ],
        out_specs=pl.BlockSpec((1, C, L), lambda b: (b, 0, 0)),
        compiler_params=pltpu.CompilerParams(
            dimension_semantics=("parallel",)),
    )(qkv_bcl, ca, temp_per_ch, mask_bias)


# ---------------------------------------------------------------------------
# Full AttentionCC forward (wrapper: reshapes only, no transposes/pads/splits)
# ---------------------------------------------------------------------------
def attention_cc_forward(x, channel_attn, params, num_heads):
    B, C, H, W = x.shape
    assert C % num_heads == 0
    assert C % 8 == 0, "channel count must be a multiple of 8 (sublane tile)"
    C3 = 3 * C
    ch = C // num_heads
    L = H * W

    w_pw = params["w_qkv"][:, :, 0, 0].astype(jnp.float32)            # (3C, C)
    b_pw = params["b_qkv"].reshape(C3, 1).astype(jnp.float32)
    w_dw9 = params["w_dw"][:, 0, :, :].reshape(C3, 9).astype(jnp.float32)
    b_dw = params["b_dw"].reshape(C3, 1).astype(jnp.float32)

    # Native NCHW view: channels on sublanes, flattened H*W on lanes (free).
    x_bcl = x.reshape(B, C, L).astype(jnp.float32)

    lane_tile = _choose_lane_tile(H, W)
    qkv = fused_qkv_dwconv(x_bcl, w_pw, b_pw, w_dw9, b_dw, W, lane_tile)

    ca = channel_attn.reshape(B, C, 1).astype(jnp.float32)
    temp_per_ch = jnp.repeat(
        params["temperature"].reshape(num_heads, 1), ch, axis=0
    ).astype(jnp.float32)                                              # (C, 1)
    cidx = jnp.arange(C)
    same_head = (cidx[:, None] // ch) == (cidx[None, :] // ch)
    mask_bias = jnp.where(same_head, 0.0, -1e30).astype(jnp.float32)   # (C, C)

    out = head_attention(qkv, ca, temp_per_ch, mask_bias)              # (B, C, L)
    return out.reshape(B, C, H, W)                                     # free


# ---------------------------------------------------------------------------
# Pure-JAX reference (mirrors the PyTorch forward exactly)
# ---------------------------------------------------------------------------
def attention_cc_reference(x, channel_attn, params, num_heads):
    B, C, H, W = x.shape
    C3 = 3 * C
    qkv = jax.lax.conv_general_dilated(
        x, params["w_qkv"], (1, 1), "VALID",
        dimension_numbers=("NCHW", "OIHW", "NCHW"))
    qkv = qkv + params["b_qkv"][None, :, None, None]
    qkv = jax.lax.conv_general_dilated(
        qkv, params["w_dw"], (1, 1), ((1, 1), (1, 1)),
        dimension_numbers=("NCHW", "OIHW", "NCHW"),
        feature_group_count=C3)
    qkv = qkv + params["b_dw"][None, :, None, None]
    q, k, v = jnp.split(qkv, 3, axis=1)
    v = channel_attn * v
    ch = C // num_heads
    q = q.reshape(B, num_heads, ch, H * W)
    k = k.reshape(B, num_heads, ch, H * W)
    v = v.reshape(B, num_heads, ch, H * W)
    qn = q / jnp.maximum(jnp.linalg.norm(q, axis=-1, keepdims=True), 1e-12)
    kn = k / jnp.maximum(jnp.linalg.norm(k, axis=-1, keepdims=True), 1e-12)
    attn = jnp.einsum("bhcl,bhdl->bhcd", qn, kn) * params["temperature"][None]
    attn = jax.nn.softmax(attn, axis=-1)
    out = jnp.einsum("bhcd,bhdl->bhcl", attn, v)
    return out.reshape(B, C, H, W)


if __name__ == "__main__":
    B, C, H, W = 2, 8, 32, 32      # dim=8, L=1024 -> 2 lane tiles (halo path hit)
    num_heads = 2                  # c_per_head = 4
    C3 = 3 * C

    key = jax.random.PRNGKey(0)
    ks = jax.random.split(key, 7)
    params = {
        "w_qkv": 0.1 * jax.random.normal(ks[0], (C3, C, 1, 1), jnp.float32),
        "b_qkv": 0.1 * jax.random.normal(ks[1], (C3,), jnp.float32),
        "w_dw": 0.1 * jax.random.normal(ks[2], (C3, 1, 3, 3), jnp.float32),
        "b_dw": 0.1 * jax.random.normal(ks[3], (C3,), jnp.float32),
        "temperature": jnp.ones((num_heads, 1, 1), jnp.float32)
                       + 0.1 * jax.random.normal(ks[4], (num_heads, 1, 1), jnp.float32),
    }
    x = jax.random.normal(ks[5], (B, C, H, W), jnp.float32)
    # channel_attn is a per-channel gate of shape (B, C, 1, 1)
    channel_attn = jax.nn.sigmoid(jax.random.normal(ks[6], (B, C, 1, 1), jnp.float32))

    out = attention_cc_forward(x, channel_attn, params, num_heads)
    out = jax.block_until_ready(out)

    ref = attention_cc_reference(x, channel_attn, params, num_heads)
    assert out.shape == (B, C, H, W)
    err = float(jnp.max(jnp.abs(out - ref)))
    # Tolerance relaxed slightly: the softmax denominator uses the EUP
    # approximate reciprocal (pl.reciprocal(approx=True), ~1e-4 relative).
    assert jnp.allclose(out, ref, atol=5e-3, rtol=5e-3), err
    print("KERNEL_OK")
</pallas_src>

<mosaic_0001>
module attributes {stable_mosaic.version = 11 : i64} {
  func.func @_fused_qkv_dwconv_kernel(%arg0: i32, %arg1: i32, %arg2: memref<1x8x512xf32, #tpu.memory_space<vmem>>, %arg3: memref<1x8x128xf32, #tpu.memory_space<vmem>>, %arg4: memref<1x8x128xf32, #tpu.memory_space<vmem>>, %arg5: memref<24x8xf32, #tpu.memory_space<vmem>>, %arg6: memref<24x1xf32, #tpu.memory_space<vmem>>, %arg7: memref<24x9xf32, #tpu.memory_space<vmem>>, %arg8: memref<24x1xf32, #tpu.memory_space<vmem>>, %arg9: memref<1x24x512xf32, #tpu.memory_space<vmem>>) attributes {dimension_semantics = [#tpu.dimension_semantics<parallel>, #tpu.dimension_semantics<parallel>], iteration_bounds = array<i64: 2, 2>, scalar_prefetch = 0 : i64, scratch_operands = 0 : i64, tpu.core_type = #tpu.core_type<tc>, window_params = [{transform_indices = @transform_0, window_bounds = array<i64: 1, 8, 512>}, {transform_indices = @transform_1, window_bounds = array<i64: 1, 8, 128>}, {transform_indices = @transform_2, window_bounds = array<i64: 1, 8, 128>}, {pipeline_mode = #tpu.pipeline_mode<synchronous>, transform_indices = @transform_3, window_bounds = array<i64: 24, 8>}, {pipeline_mode = #tpu.pipeline_mode<synchronous>, transform_indices = @transform_4, window_bounds = array<i64: 24, 1>}, {pipeline_mode = #tpu.pipeline_mode<synchronous>, transform_indices = @transform_5, window_bounds = array<i64: 24, 9>}, {pipeline_mode = #tpu.pipeline_mode<synchronous>, transform_indices = @transform_6, window_bounds = array<i64: 24, 1>}, {transform_indices = @transform_7, window_bounds = array<i64: 1, 24, 512>}]} {
    %c0 = arith.constant 0 : index
    %c0_0 = arith.constant 0 : index
    %0 = vector.load %arg5[%c0, %c0_0] : memref<24x8xf32, #tpu.memory_space<vmem>>, vector<24x8xf32>
    %c0_1 = arith.constant 0 : index
    %c0_2 = arith.constant 0 : index
    %1 = vector.load %arg6[%c0_1, %c0_2] : memref<24x1xf32, #tpu.memory_space<vmem>>, vector<24x1xf32>
    %c0_3 = arith.constant 0 : index
    %c0_4 = arith.constant 0 : index
    %c0_5 = arith.constant 0 : index
    %2 = vector.load %arg2[%c0_3, %c0_4, %c0_5] : memref<1x8x512xf32, #tpu.memory_space<vmem>>, vector<1x8x512xf32>
    %3 = vector.shape_cast %2 : vector<1x8x512xf32> to vector<8x512xf32>
    %cst = arith.constant dense<0.000000e+00> : vector<24x512xf32>
    %4 = tpu.matmul %0, %3, %cst {dimension_numbers = #tpu.dot_dimension_numbers<[1], [0], [0], [1], [0, 0, 1, 1], [], []>} : vector<24x8xf32>, vector<8x512xf32>, vector<24x512xf32> -> vector<24x512xf32>
    %5 = vector.broadcast %1 : vector<24x1xf32> to vector<24x512xf32>
    %6 = arith.addf %4, %5 : vector<24x512xf32>
    %c0_6 = arith.constant 0 : index
    %c0_7 = arith.constant 0 : index
    %c0_8 = arith.constant 0 : index
    %7 = vector.load %arg3[%c0_6, %c0_7, %c0_8] : memref<1x8x128xf32, #tpu.memory_space<vmem>>, vector<1x8x128xf32>
    %8 = vector.shape_cast %7 : vector<1x8x128xf32> to vector<8x128xf32>
    %9 = vector.extract_strided_slice %8 {offsets = [0, 96], sizes = [8, 32], strides = [1, 1]} : vector<8x128xf32> to vector<8x32xf32>
    %c0_9 = arith.constant 0 : index
    %c0_10 = arith.constant 0 : index
    %c0_11 = arith.constant 0 : index
    %10 = vector.load %arg4[%c0_9, %c0_10, %c0_11] : memref<1x8x128xf32, #tpu.memory_space<vmem>>, vector<1x8x128xf32>
    %11 = vector.shape_cast %10 : vector<1x8x128xf32> to vector<8x128xf32>
    %12 = vector.extract_strided_slice %11 {offsets = [0, 0], sizes = [8, 32], strides = [1, 1]} : vector<8x128xf32> to vector<8x32xf32>
    %c0_i32 = arith.constant 0 : i32
    %13 = arith.cmpi sgt, %arg1, %c0_i32 : i32
    %cst_12 = arith.constant 1.000000e+00 : f32
    %cst_13 = arith.constant 0.000000e+00 : f32
    %14 = arith.select %13, %cst_12, %cst_13 : f32
    %c1_i32 = arith.constant 1 : i32
    %15 = arith.cmpi slt, %arg1, %c1_i32 : i32
    %cst_14 = arith.constant 1.000000e+00 : f32
    %cst_15 = arith.constant 0.000000e+00 : f32
    %16 = arith.select %15, %cst_14, %cst_15 : f32
    %cst_16 = arith.constant dense<0.000000e+00> : vector<24x32xf32>
    %17 = tpu.matmul %0, %9, %cst_16 {dimension_numbers = #tpu.dot_dimension_numbers<[1], [0], [0], [1], [0, 0, 1, 1], [], []>} : vector<24x8xf32>, vector<8x32xf32>, vector<24x32xf32> -> vector<24x32xf32>
    %18 = vector.broadcast %1 : vector<24x1xf32> to vector<24x32xf32>
    %19 = arith.addf %17, %18 : vector<24x32xf32>
    %20 = vector.broadcast %14 : f32 to vector<24x32xf32>
    %21 = arith.mulf %19, %20 : vector<24x32xf32>
    %cst_17 = arith.constant dense<0.000000e+00> : vector<24x32xf32>
    %22 = tpu.matmul %0, %12, %cst_17 {dimension_numbers = #tpu.dot_dimension_numbers<[1], [0], [0], [1], [0, 0, 1, 1], [], []>} : vector<24x8xf32>, vector<8x32xf32>, vector<24x32xf32> -> vector<24x32xf32>
    %23 = vector.broadcast %1 : vector<24x1xf32> to vector<24x32xf32>
    %24 = arith.addf %22, %23 : vector<24x32xf32>
    %25 = vector.broadcast %16 : f32 to vector<24x32xf32>
    %26 = arith.mulf %24, %25 : vector<24x32xf32>
    %cst_18 = arith.constant 0.000000e+00 : f32
    %27 = vector.broadcast %cst_18 : f32 to vector<24x1xf32>
    %28 = tpu.concatenate %27, %21, %6, %26, %27 in 1 : vector<24x1xf32>, vector<24x32xf32>, vector<24x512xf32>, vector<24x32xf32>, vector<24x1xf32> -> vector<24x578xf32>
    %29 = tpu.iota {dimensions = array<i32: 1>} : vector<1x512xi32>
    %c32_i32 = arith.constant 32 : i32
    %c0_i32_19 = arith.constant 0 : i32
    %30 = arith.cmpi eq, %c32_i32, %c0_i32_19 : i32
    %c1_i32_20 = arith.constant 1 : i32
    %31 = arith.select %30, %c1_i32_20, %c32_i32 : i32
    %32 = vector.broadcast %31 : i32 to vector<1x512xi32>
    %33 = arith.remsi %29, %32 : vector<1x512xi32>
    %c0_i32_21 = arith.constant 0 : i32
    %34 = vector.broadcast %c0_i32_21 : i32 to vector<1x512xi32>
    %35 = arith.cmpi ne, %33, %34 : vector<1x512xi32>
    %c0_i32_22 = arith.constant 0 : i32
    %36 = vector.broadcast %c0_i32_22 : i32 to vector<1x512xi32>
    %37 = arith.cmpi slt, %33, %36 : vector<1x512xi32>
    %c0_i32_23 = arith.constant 0 : i32
    %38 = arith.cmpi slt, %31, %c0_i32_23 : i32
    %39 = vector.broadcast %38 : i1 to vector<1x512xi1>
    %40 = vector.broadcast %39 : vector<1x512xi1> to vector<1x512xi1>
    %41 = arith.xori %37, %40 : vector<1x512xi1>
    %42 = arith.andi %41, %35 : vector<1x512xi1>
    %43 = vector.broadcast %31 : i32 to vector<1x512xi32>
    %44 = arith.addi %33, %43 : vector<1x512xi32>
    %45 = arith.select %42, %44, %33 : vector<1x512xi1>, vector<1x512xi32>
    %c1_i32_24 = arith.constant 1 : i32
    %46 = vector.broadcast %c1_i32_24 : i32 to vector<1x512xi32>
    %47 = arith.cmpi sge, %45, %46 : vector<1x512xi32>
    %48 = arith.extui %47 : vector<1x512xi1> to vector<1x512xi32>
    %49 = arith.sitofp %48 : vector<1x512xi32> to vector<1x512xf32>
    %c30_i32 = arith.constant 30 : i32
    %50 = vector.broadcast %c30_i32 : i32 to vector<1x512xi32>
    %51 = arith.cmpi sle, %45, %50 : vector<1x512xi32>
    %52 = arith.extui %51 : vector<1x512xi1> to vector<1x512xi32>
    %53 = arith.sitofp %52 : vector<1x512xi32> to vector<1x512xf32>
    %c0_25 = arith.constant 0 : index
    %c0_26 = arith.constant 0 : index
    %54 = vector.load %arg7[%c0_25, %c0_26] : memref<24x9xf32, #tpu.memory_space<vmem>>, vector<24x9xf32>
    %cst_27 = arith.constant 0.000000e+00 : f32
    %55 = vector.broadcast %cst_27 : f32 to vector<24x512xf32>
    %56 = vector.extract_strided_slice %28 {offsets = [0, 0], sizes = [24, 512], strides = [1, 1]} : vector<24x578xf32> to vector<24x512xf32>
    %57 = vector.extract_strided_slice %54 {offsets = [0, 0], sizes = [24, 1], strides = [1, 1]} : vector<24x9xf32> to vector<24x1xf32>
    %58 = vector.broadcast %57 : vector<24x1xf32> to vector<24x512xf32>
    %59 = arith.mulf %56, %58 : vector<24x512xf32>
    %60 = vector.broadcast %49 : vector<1x512xf32> to vector<24x512xf32>
    %61 = arith.mulf %59, %60 : vector<24x512xf32>
    %62 = arith.addf %55, %61 : vector<24x512xf32>
    %63 = vector.extract_strided_slice %28 {offsets = [0, 1], sizes = [24, 512], strides = [1, 1]} : vector<24x578xf32> to vector<24x512xf32>
    %64 = vector.extract_strided_slice %54 {offsets = [0, 1], sizes = [24, 1], strides = [1, 1]} : vector<24x9xf32> to vector<24x1xf32>
    %65 = vector.broadcast %64 : vector<24x1xf32> to vector<24x512xf32>
    %66 = arith.mulf %63, %65 : vector<24x512xf32>
    %67 = arith.addf %62, %66 : vector<24x512xf32>
    %68 = vector.extract_strided_slice %28 {offsets = [0, 2], sizes = [24, 512], strides = [1, 1]} : vector<24x578xf32> to vector<24x512xf32>
    %69 = vector.extract_strided_slice %54 {offsets = [0, 2], sizes = [24, 1], strides = [1, 1]} : vector<24x9xf32> to vector<24x1xf32>
    %70 = vector.broadcast %69 : vector<24x1xf32> to vector<24x512xf32>
    %71 = arith.mulf %68, %70 : vector<24x512xf32>
    %72 = vector.broadcast %53 : vector<1x512xf32> to vector<24x512xf32>
    %73 = arith.mulf %71, %72 : vector<24x512xf32>
    %74 = arith.addf %67, %73 : vector<24x512xf32>
    %75 = vector.extract_strided_slice %28 {offsets = [0, 32], sizes = [24, 512], strides = [1, 1]} : vector<24x578xf32> to vector<24x512xf32>
    %76 = vector.extract_strided_slice %54 {offsets = [0, 3], sizes = [24, 1], strides = [1, 1]} : vector<24x9xf32> to vector<24x1xf32>
    %77 = vector.broadcast %76 : vector<24x1xf32> to vector<24x512xf32>
    %78 = arith.mulf %75, %77 : vector<24x512xf32>
    %79 = vector.broadcast %49 : vector<1x512xf32> to vector<24x512xf32>
    %80 = arith.mulf %78, %79 : vector<24x512xf32>
    %81 = arith.addf %74, %80 : vector<24x512xf32>
    %82 = vector.extract_strided_slice %28 {offsets = [0, 33], sizes = [24, 512], strides = [1, 1]} : vector<24x578xf32> to vector<24x512xf32>
    %83 = vector.extract_strided_slice %54 {offsets = [0, 4], sizes = [24, 1], strides = [1, 1]} : vector<24x9xf32> to vector<24x1xf32>
    %84 = vector.broadcast %83 : vector<24x1xf32> to vector<24x512xf32>
    %85 = arith.mulf %82, %84 : vector<24x512xf32>
    %86 = arith.addf %81, %85 : vector<24x512xf32>
    %87 = vector.extract_strided_slice %28 {offsets = [0, 34], sizes = [24, 512], strides = [1, 1]} : vector<24x578xf32> to vector<24x512xf32>
    %88 = vector.extract_strided_slice %54 {offsets = [0, 5], sizes = [24, 1], strides = [1, 1]} : vector<24x9xf32> to vector<24x1xf32>
    %89 = vector.broadcast %88 : vector<24x1xf32> to vector<24x512xf32>
    %90 = arith.mulf %87, %89 : vector<24x512xf32>
    %91 = vector.broadcast %53 : vector<1x512xf32> to vector<24x512xf32>
    %92 = arith.mulf %90, %91 : vector<24x512xf32>
    %93 = arith.addf %86, %92 : vector<24x512xf32>
    %94 = vector.extract_strided_slice %28 {offsets = [0, 64], sizes = [24, 512], strides = [1, 1]} : vector<24x578xf32> to vector<24x512xf32>
    %95 = vector.extract_strided_slice %54 {offsets = [0, 6], sizes = [24, 1], strides = [1, 1]} : vector<24x9xf32> to vector<24x1xf32>
    %96 = vector.broadcast %95 : vector<24x1xf32> to vector<24x512xf32>
    %97 = arith.mulf %94, %96 : vector<24x512xf32>
    %98 = vector.broadcast %49 : vector<1x512xf32> to vector<24x512xf32>
    %99 = arith.mulf %97, %98 : vector<24x512xf32>
    %100 = arith.addf %93, %99 : vector<24x512xf32>
    %101 = vector.extract_strided_slice %28 {offsets = [0, 65], sizes = [24, 512], strides = [1, 1]} : vector<24x578xf32> to vector<24x512xf32>
    %102 = vector.extract_strided_slice %54 {offsets = [0, 7], sizes = [24, 1], strides = [1, 1]} : vector<24x9xf32> to vector<24x1xf32>
    %103 = vector.broadcast %102 : vector<24x1xf32> to vector<24x512xf32>
    %104 = arith.mulf %101, %103 : vector<24x512xf32>
    %105 = arith.addf %100, %104 : vector<24x512xf32>
    %106 = vector.extract_strided_slice %28 {offsets = [0, 66], sizes = [24, 512], strides = [1, 1]} : vector<24x578xf32> to vector<24x512xf32>
    %107 = vector.extract_strided_slice %54 {offsets = [0, 8], sizes = [24, 1], strides = [1, 1]} : vector<24x9xf32> to vector<24x1xf32>
    %108 = vector.broadcast %107 : vector<24x1xf32> to vector<24x512xf32>
    %109 = arith.mulf %106, %108 : vector<24x512xf32>
    %110 = vector.broadcast %53 : vector<1x512xf32> to vector<24x512xf32>
    %111 = arith.mulf %109, %110 : vector<24x512xf32>
    %112 = arith.addf %105, %111 : vector<24x512xf32>
    %c0_28 = arith.constant 0 : index
    %c0_29 = arith.constant 0 : index
    %113 = vector.load %arg8[%c0_28, %c0_29] : memref<24x1xf32, #tpu.memory_space<vmem>>, vector<24x1xf32>
    %114 = vector.broadcast %113 : vector<24x1xf32> to vector<24x512xf32>
    %115 = arith.addf %112, %114 : vector<24x512xf32>
    %c0_30 = arith.constant 0 : index
    %c0_31 = arith.constant 0 : index
    %c0_32 = arith.constant 0 : index
    %116 = vector.load %arg9[%c0_30, %c0_31, %c0_32] : memref<1x24x512xf32, #tpu.memory_space<vmem>>, vector<1x24x512xf32>
    %117 = vector.shape_cast %116 : vector<1x24x512xf32> to vector<24x512xf32>
    %118 = vector.shape_cast %115 : vector<24x512xf32> to vector<1x24x512xf32>
    tpu.vector_store %arg9[%c0_30, %c0_31, %c0_32], %118 {strides = array<i32>} : memref<1x24x512xf32, #tpu.memory_space<vmem>>, vector<1x24x512xf32>,
    return
  }
  func.func @transform_0(%arg0: i32, %arg1: i32) -> (i32, i32, i32) {
    %c0_i32 = arith.constant 0 : i32
    %c0_i32_0 = arith.constant 0 : i32
    return %arg0, %c0_i32, %arg1 : i32, i32, i32
  }
  func.func @transform_1(%arg0: i32, %arg1: i32) -> (i32, i32, i32) {
    %c4_i32 = arith.constant 4 : i32
    %0 = arith.muli %arg1, %c4_i32 : i32
    %c1_i32 = arith.constant 1 : i32
    %1 = arith.subi %0, %c1_i32 : i32
    %c0_i32 = arith.constant 0 : i32
    %2 = arith.maxsi %1, %c0_i32 : i32
    %c0_i32_0 = arith.constant 0 : i32
    %c0_i32_1 = arith.constant 0 : i32
    return %arg0, %c0_i32_0, %2 : i32, i32, i32
  }
  func.func @transform_2(%arg0: i32, %arg1: i32) -> (i32, i32, i32) {
    %c1_i32 = arith.constant 1 : i32
    %0 = arith.addi %arg1, %c1_i32 : i32
    %c4_i32 = arith.constant 4 : i32
    %1 = arith.muli %0, %c4_i32 : i32
    %c7_i32 = arith.constant 7 : i32
    %2 = arith.minsi %1, %c7_i32 : i32
    %c0_i32 = arith.constant 0 : i32
    %c0_i32_0 = arith.constant 0 : i32
    return %arg0, %c0_i32, %2 : i32, i32, i32
  }
  func.func @transform_3(%arg0: i32, %arg1: i32) -> (i32, i32) {
    %c0_i32 = arith.constant 0 : i32
    %c0_i32_0 = arith.constant 0 : i32
    %c0_i32_1 = arith.constant 0 : i32
    return %c0_i32, %c0_i32_0 : i32, i32
  }
  func.func @transform_4(%arg0: i32, %arg1: i32) -> (i32, i32) {
    %c0_i32 = arith.constant 0 : i32
    %c0_i32_0 = arith.constant 0 : i32
    %c0_i32_1 = arith.constant 0 : i32
    return %c0_i32, %c0_i32_0 : i32, i32
  }
  func.func @transform_5(%arg0: i32, %arg1: i32) -> (i32, i32) {
    %c0_i32 = arith.constant 0 : i32
    %c0_i32_0 = arith.constant 0 : i32
    %c0_i32_1 = arith.constant 0 : i32
    return %c0_i32, %c0_i32_0 : i32, i32
  }
  func.func @transform_6(%arg0: i32, %arg1: i32) -> (i32, i32) {
    %c0_i32 = arith.constant 0 : i32
    %c0_i32_0 = arith.constant 0 : i32
    %c0_i32_1 = arith.constant 0 : i32
    return %c0_i32, %c0_i32_0 : i32, i32
  }
  func.func @transform_7(%arg0: i32, %arg1: i32) -> (i32, i32, i32) {
    %c0_i32 = arith.constant 0 : i32
    %c0_i32_0 = arith.constant 0 : i32
    return %arg0, %c0_i32, %arg1 : i32, i32, i32
  }
}

</mosaic_0001>

<bundles_post_ra>
// kernel: tpu_custom_call.1
= control target key start
LH: loop header
LB: loop body
LE: loop exit
PB: predicated region body
PF: predicated region fallthrough
CT: control target
= control target key end

     0   :  { %s4504_s0 = inlined_call_operand.hbm [shape: f32[2,8,1024], index: 0, kind: input, shape index: {}]   ;;  %s4505_s1 = inlined_call_operand.hbm [shape: f32[2,8,1024], index: 1, kind: input, shape index: {}]   ;;  %s4506_s2 = inlined_call_operand.vmem [shape: f32[2,8,1024], index: 2, kind: input, shape index: {}]   ;;  %s4507_s3 = inlined_call_operand.vmem [shape: f32[24,8], index: 3, kind: input, shape index: {}]   ;;  %s4508_s4 = inlined_call_operand.vmem [shape: f32[24,1], index: 4, kind: input, shape index: {}]   ;;  %s4509_s5 = inlined_call_operand.vmem [shape: f32[24,9], index: 5, kind: input, shape index: {}]   ;;  %s4510_s6 = inlined_call_operand.vmem [shape: f32[24,1], index: 6, kind: input, shape index: {}]   ;;  %s4511_s7 = inlined_call_operand.hbm [shape: f32[2,24,1024], index: 7, kind: output, shape index: {}]  }
   0x1   :  { %4591 = sst [smem:[#allocation58_spill]] %s4504_s0 }
   0x2   :  { %4592 = sst [smem:[#allocation59_spill]] %s4506_s2 }
   0x3   :  { %4593 = sst [smem:[#allocation60_spill]] %s4507_s3 }
   0x4   :  { %4594 = sst [smem:[#allocation61_spill]] %s4508_s4 }
   0x5   :  { %4595 = sst [smem:[#allocation62_spill]] %s4509_s5 }
   0x6   :  { %4596 = sst [smem:[#allocation63_spill]] %s4510_s6 }
   0x7   :  { %4597 = sst [smem:[#allocation64_spill]] %s4511_s7 }
   0x8   :  { %12 = vsyncpa [#allocation3], 0 }
   0x9   :  { %14 = vsyncpa [#allocation3 + $0x1], 0 }
   0xa   :  { %15 = vsyncpa [#allocation6], 0 }
   0xb   :  { %17 = vsyncpa [#allocation6 + $0x1], 0 }
   0xc   :  { %18 = vsyncpa [#allocation4], 0 }
   0xd   :  { %20 = vsyncpa [#allocation4 + $0x1], 0  ;;  %s2821_s24 = smov 0   ;;  %s2823_s25 = smov 0  }
   0xe   :  { %s2825_s26 = smov 0   ;;  %s2827_s27 = smov 0  }
   0xf   :  { %s2829_s28 = smov 0   ;;  %s2831_s29 = smov 0  }
  0x10   :  { %s2833_s30 = smov 0   ;;  %s2835_s8 = smov 0  }
  0x11   :  { %s2837_s9 = smov 0   ;;  %s2839_s10 = smov 0  }
  0x12   :  { %s2841_s11 = smov 0  }
  0x13 LB: > { %4598 = sst [smem:[#allocation11_spill]] %s2721_s27  ;;  %s2270_s12 = sadd.s32 4294967295, %s2749_s11   ;;  %s2749_s11 = sphi %s2841_s11, %s26_s11   ;;  %s2745_s10 = sphi %s2839_s10, %s4755_s10   ;;  %s2741_s9 = sphi %s2837_s9, %s4746_s9   ;;  %s2737_s8 = sphi %s2835_s8, %s4754_s8   ;;  %s2733_s30 = sphi %s2833_s30, %s4745_s30   ;;  %s2729_s29 = sphi %s2831_s29, %s4753_s29   ;;  %s2725_s28 = sphi %s2829_s28, %s4752_s28   ;;  %s2721_s27 = sphi %s2827_s27, %s4751_s27   ;;  %s2717_s26 = sphi %s2825_s26, %s4750_s26   ;;  %s2713_s25 = sphi %s2823_s25, %s4749_s25   ;;  %s2709_s24 = sphi %s2821_s24, %s4748_s24  }
  0x14   : > { %4599 = sst [smem:[#allocation12_spill]] %s2737_s8  ;;  %s2271_s13 = sadd.s32 4294967294, %s2749_s11  }
  0x15   : > { %4600 = sst [smem:[#allocation13_spill]] %s2741_s9  ;;  %s35_s14 = sadd.s32 1, %s2741_s9 }
  0x16   : > { %s38_s15 = sadd.s32 1, %s2745_s10  ;;  %p36_p0 = scmp.ge.s32.totalorder %s35_s14, 2 }
  0x17   : > { %p54_p1 = scmp.ne.s32.totalorder %s2729_s29, %s2725_s28  ;;  %p4519_p2 = scmp.eq.s32.totalorder %s2749_s11, 0 }
  0x18   : > { %s4757_s14 = smov (%p36_p0, %s35_s14), 0  ;;  %s4759_s15 = smov (!%p36_p0, %s38_s15), %s2745_s10 }
  0x19   : > { %4601 = sst [smem:[#allocation14_spill]] %s4757_s14  ;;  %p2896_p3 = por %p4519_p2, %p54_p1 }
  0x1a   : > { %p60_p4 = scmp.ne.s32.totalorder %s2725_s28, %s2721_s27  ;;  %p2902_p5 = scmp.eq.s32.totalorder %s2270_s12, 0 }
  0x1b   : > { %s2272_s20 = sshll.u32 %s2741_s9, 2  ;;  %p242_p6 = scmp.eq.s32.totalorder %s2270_s12, 3 }
  0x1c   : > { %p2909_p7 = por %p2902_p5, %p60_p4  ;;  %s2913_s22 = sadd.s32 4294967295, %s2272_s20 }
  0x1d   : > { %p2919_p9 = por %p242_p6, %p54_p1  ;;  %p248_p10 = scmp.eq.s32.totalorder %s2271_s13, 3 }
  0x1e   : > { %s4604_s21 = scalar_select %p2909_p7, 1, 0 }
  0x1f   : > { %s4605_s23 = scalar_select %p2919_p9, 1, 0 }
  0x20   : > { %p4520_p11 = scmp.lt.s32.totalorder %s2749_s11, 4  ;;  %s280_s12 = sand.u32 1, %s2729_s29  }
  0x21   : > { %p2925_p12 = por %p248_p10, %p60_p4  ;;  %s2280_s17 = sshll.u32 %s280_s12, 5 }
  0x22   : > { %s2282_s27 = sshll.u32 %s2745_s10, 3  ;;  %s284_s5 = scalar_lea.vmem [#allocation2], %s2280_s17 }
  0x23   : > { %s4606_s16 = scalar_select %p2925_p12, 1, 0 }
  0x24   : > { %s290_s7 = sadd.s32 %s2282_s27, %s2272_s20  ;;  %s294_s2 = sshll.u32 %s284_s5, 4  ;;  %s2937_s2 = int_to_ptr.vmem [resolvable:$true] %s294_s2 }
  0x25   : > { %s2283_s6 = sshll.u32 %s290_s7, 7  ;;  %s4607_s0 = sld [smem:[#allocation58_spill]] }
  0x26   : > { %p2943_p13 = pnand %p4520_p11, %p2896_p3  ;;  %s281_s5 = scalar_lea.sflag [#allocation3], %s280_s12 }
  0x28   : > { %p2565_p6 = pneg %p2943_p13 }
  0x2b   : > { %s2935_s8 = scalar_lea.hbm %s4607_s0, %s2283_s6  ;;  %s2568_s7 = scalar_lea.hbm %s4607_s0, 2048 }
  0x2c   : > { %s2563_s3 = scalar_lea.hbm %s2935_s8, 512  ;;  %p2569_p3 = scmp.lt.u32.totalorder %s2935_s8, %s4607_s0 }
  0x2d   : > { %p2564_p4 = scmp.ne.s32.totalorder %s2935_s8, %s2563_s3  ;;  %p2570_p11 = scmp.lt.u32.totalorder %s2568_s7, %s2563_s3 }
  0x2e   : > { %p2572_p0 = scmp.lt.u32.totalorder %s2563_s3, %s2935_s8 }
  0x2f   : > { %p2566_p10 = pnand %p2565_p6, %p2564_p4  ;;  %p2571_p8 = por %p2570_p11, %p2569_p3 }
  0x31   : > { %p2567_p2 = pneg %p2566_p10  ;;  %p2573_p1 = por %p2572_p0, %p2571_p8 }
  0x33   : > { %p2574_p12 = pnand %p2573_p1, %p2567_p2 }
  0x35   : > { %2577 = shalt.err (!%p2574_p12)
}
  0x36   : > { %s2578_s20 = scalar_lea.vmem %s2937_s2, 512  ;;  %s2751_s12 = smov [#allocation2]  }
  0x37   : > { %p2579_p4 = scmp.ne.s32.totalorder %s2937_s2, %s2578_s20  ;;  %s2583_s4 = sshll.u32 %s2751_s12, 4  ;;  %s2584_s4 = int_to_ptr.vmem [resolvable:$false] %s2583_s4 }
  0x38   : > { %s2585_s6 = scalar_lea.vmem %s2584_s4, 1024  ;;  %p2586_p7 = scmp.lt.s32.totalorder %s2937_s2, %s2584_s4 }
  0x39   : > { %p2581_p10 = pnand %p2579_p4, %p2565_p6  ;;  %p2587_p11 = scmp.lt.s32.totalorder %s2585_s6, %s2578_s20 }
  0x3b   : > { %p2582_p9 = pneg %p2581_p10  ;;  %p2588_p3 = por %p2587_p11, %p2586_p7 }
  0x3d   : > { %p2589_p8 = pnand %p2588_p3, %p2582_p9 }
  0x3f   : > { %2592 = shalt.err (!%p2589_p8)
}
  0x40   : > { %2369 = dma.hbm_to_vmem [thread:$0]  (!%p2943_p13), %s2935_s8, 512, %s2937_s2, %s281_s5  }
  0x41   : > { %p4609_p2 = scmp.lt.s32.totalorder %s2749_s11, 5  ;;  %p4610_p7 = scmp.ge.s32.totalorder %s2749_s11, 1 }
  0x42   : > { %p40_p12 = scmp.ge.s32.totalorder %s4759_s15, 2  ;;  %p4612_p0 = scmp.gt.s32.totalorder %s2913_s22, 0 }
  0x43   : > { %p2978_p9 = pnand %p4610_p7, %p4609_p2  ;;  %s2274_s3 = sshll.u32 %s4757_s14, 2 }
  0x44   : > { %s4761_s22 = smov (!%p4612_p0, %s2913_s22), 0  ;;  %s4763_s15 = smov (%p40_p12, %s4759_s15), 0 }
  0x45   : > { %4613 = sst [smem:[#allocation15_spill]] %s4763_s15  ;;  %s83_s7 = sadd.s32 1, %s2717_s26 }
  0x46   : > { %s42_s2 = ssub.s32 %s2745_s10, %s4763_s15  ;;  %s2275_s8 = sadd.s32 4294967295, %s2274_s3 }
  0x47   : > { %s4614_s5 = ssub.s32 %s2741_s9, %s4757_s14  ;;  %p76_p13 = scmp.gt.s32.totalorder %s2275_s8, 0 }
  0x48   : > { %s44_s17 = sor.u32 %s4614_s5, %s42_s2  ;;  %p90_p6 = scmp.ne.s32.totalorder %s2717_s26, %s2713_s25 }
  0x49   : > { %p45_p1 = scmp.eq.s32.totalorder %s44_s17, 0  ;;  %s4765_s8 = smov (!%p76_p13, %s2275_s8), 0 }
  0x4a   : > { %s4615_s18 = sadd.s32 1, %s2729_s29  ;;  %s79_s12 = ssub.s32 %s4761_s22, %s4765_s8 }
  0x4b   : > { %s3001_s20 = scalar_select %p45_p1, %s2729_s29, %s4615_s18  }
  0x4c   : > { %p4616_p4 = scmp.eq.s32.totalorder %s2749_s11, 0  ;;  %s80_s6 = sor.u32 %s79_s12, %s42_s2 }
  0x4d   : > { %p96_p11 = scmp.ne.s32.totalorder %s2713_s25, %s2709_s24  ;;  %p81_p3 = scmp.eq.s32.totalorder %s80_s6, 0 }
  0x4e   : > { %p3005_p10 = por %p90_p6, %p4616_p4  ;;  %s301_s3 = sand.u32 1, %s2717_s26  }
  0x4f   : > { %p3014_p8 = por %p96_p11, %p2902_p5  ;;  %s2284_s18 = sshll.u32 %s301_s3, 3 }
  0x50   : > { %s3019_s17 = scalar_select %p81_p3, %s2717_s26, %s83_s7  }
  0x51   : > { %s4618_s5 = scalar_select %p3014_p8, 1, 0 }
  0x52   : > { %s314_s8 = sadd.s32 %s2282_s27, %s4761_s22  ;;  %s305_s24 = scalar_lea.vmem [#allocation5], %s2284_s18 }
  0x53   : > { %s2288_s0 = sshll.u32 %s314_s8, 7  ;;  %s318_s19 = sshll.u32 %s305_s24, 4  ;;  %s3028_s19 = int_to_ptr.vmem [resolvable:$true] %s318_s19 }
  0x54   : > { %s3026_s9 = scalar_lea.hbm %s4505_s1, %s2288_s0  ;;  %p4619_p5 = scmp.lt.s32.totalorder %s2749_s11, 4 }
  0x55   : > { %s302_s27 = scalar_lea.sflag [#allocation6], %s301_s3  ;;  %s2593_s14 = scalar_lea.hbm %s3026_s9, 128 }
  0x56   : > { %p3034_p2 = pnand %p4619_p5, %p3005_p10  ;;  %p2594_p7 = scmp.ne.s32.totalorder %s3026_s9, %s2593_s14 }
  0x57   : > { %s2598_s22 = scalar_lea.hbm %s4505_s1, 2048  ;;  %p2599_p1 = scmp.lt.u32.totalorder %s3026_s9, %s4505_s1 }
  0x58   : > { %p2595_p12 = pneg %p3034_p2  ;;  %p2600_p6 = scmp.lt.u32.totalorder %s2598_s22, %s2593_s14 }
  0x59   : > { %p2602_p10 = scmp.lt.u32.totalorder %s2593_s14, %s3026_s9 }
  0x5a   : > { %p2596_p0 = pnand %p2595_p12, %p2594_p7  ;;  %p2601_p4 = por %p2600_p6, %p2599_p1 }
  0x5c   : > { %p2597_p13 = pneg %p2596_p0  ;;  %p2603_p11 = por %p2602_p10, %p2601_p4 }
  0x5e   : > { %p2604_p3 = pnand %p2603_p11, %p2597_p13 }
  0x60   : > { %2607 = shalt.err (!%p2604_p3)
}
  0x61   : > { %s2608_s4 = scalar_lea.vmem %s3028_s19, 128  ;;  %s2752_s6 = smov [#allocation5]  }
  0x62   : > { %p2609_p5 = scmp.ne.s32.totalorder %s3028_s19, %s2608_s4  ;;  %s2613_s3 = sshll.u32 %s2752_s6, 4  ;;  %s2614_s3 = int_to_ptr.vmem [resolvable:$false] %s2613_s3 }
  0x63   : > { %s2615_s18 = scalar_lea.vmem %s2614_s3, 256  ;;  %p2616_p8 = scmp.lt.s32.totalorder %s3028_s19, %s2614_s3 }
  0x64   : > { %p2611_p7 = pnand %p2609_p5, %p2595_p12  ;;  %p2617_p1 = scmp.lt.s32.totalorder %s2615_s18, %s2608_s4 }
  0x66   : > { %p2612_p0 = pneg %p2611_p7  ;;  %p2618_p6 = por %p2617_p1, %p2616_p8 }
  0x68   : > { %p2619_p4 = pnand %p2618_p6, %p2612_p0 }
  0x6a   : > { %2622 = shalt.err (!%p2619_p4)
}
  0x6b   : > { %2372 = dma.hbm_to_vmem [thread:$0]  (!%p3034_p2), %s3026_s9, 128, %s3028_s19, %s302_s27  }
  0x6c   : > { %346 = sbr.rel (%p2978_p9) target bundleno = 859 (0x35b), region = 48 }
  0x73   : > { %s3066_s8 = sand.u32 1, %s2725_s28   ;;  %p4621_p8 = scmp.ne.s32.totalorder %s4604_s21, 0 }
  0x74   : > { %s2290_s24 = sshll.u32 %s3066_s8, 5  ;;  %s349_s14 = scalar_lea.sflag [#allocation3], %s3066_s8 }
  0x75   : > { %s3070_s0 = scalar_lea.vmem [#allocation2], %s2290_s24 }
  0x76   : > { %2696 = dma.done.wait (%p4621_p8), %s349_s14, 512  }
  0x77   : > { %2698 = vsyncadd (%p4621_p8), %s349_s14, 4294966784  ;;  %s357_s9 = sand.u32 1, %s2713_s25   ;;  %p4622_p9 = scmp.ne.s32.totalorder %s4618_s5, 0 }
  0x78   : > { %s3077_s13 = sshll.u32 %s357_s9, 3  ;;  %s358_s19 = scalar_lea.sflag [#allocation6], %s357_s9 }
  0x79   : > { %s361_s7 = scalar_lea.vmem [#allocation5], %s3077_s13 }
  0x7a   : > { %2700 = dma.done.wait (%p4622_p9), %s358_s19, 128  }
  0x7b   : > { %2702 = vsyncadd (%p4622_p9), %s358_s19, 4294967168  ;;  %s4623_s27 = sld [smem:[#allocation12_spill]]  ;;  %s2326_s15 = sshll.u32 %s2733_s30, 2  ;;  %v909_v0 = vlaneseq  ;;  %v2753_v1 = vmov 0   ;;  %v2754_v2 = vmov 0.0   ;;  %v2755_v3 = vmov 1  }
  0x7c   : > { %2494 = vset.pattern.permute.xlu1 %v2753_v1  ;;  %530 = vmatprep.mubr.f32.mxu0 %v2754_v2  ;;  %s2327_s21 = sadd.s32 4, %s2326_s15  ;;  %v438_v6 = vld [vmem:[%s3070_s0 + $0x8] sm:$0xff]  ;;  %v440_v7 = vld [vmem:[%s3070_s0 + $0x18] sm:$0xff]  ;;  %s4624_s4 = sld [smem:[#allocation61_spill]]  ;;  %vm456_vm0 = vcmask 64512   ;;  %v437_v9 = vld [vmem:[%s3070_s0] sm:$0xff] }
  0x7d   : > { %613 = vmatprep.mubr.f32.mxu1 %v2754_v2  ;;  %p416_p12 = scmp.lt.s32.totalorder %s2327_s21, 7  ;;  %2496 = vset.pattern.permute.xlu0 %v2755_v3  ;;  %v3093_v4 = vand.u32 127, %v909_v0  ;;  %v439_v10 = vld [vmem:[%s3070_s0 + $0x10] sm:$0xff]  ;;  %s4625_s18 = sld [smem:[#allocation60_spill]]  ;;  %v632_v14 = vld [vmem:[%s361_s7] sm:$0xff]  ;;  %v2757_v24 = vmov 2  }
  0x7e   : > { %466 = vmatprep.subr.mxu0 %v438_v6  ;;  %549 = vmatprep.subr.mxu1 %v440_v7  ;;  %s4626_s19 = sld [smem:[#allocation59_spill]]  ;;  %s2756_s13 = smov 32   ;;  %vm2758_vm3 = vmmov 0   ;;  %v2760_v29 = vmov 3   ;;  %v2761_v35 = vmov 4   ;;  %v2762_v37 = vmov 5  }
  0x7f   : > { %s4767_s21 = smov (!%p416_p12, %s2327_s21), 7  ;;  %v3096_v5 = vadd.s32 128, %v3093_v4  ;;  %467 = vmatpush1.msra.mxu0 %v437_v9  ;;  %v918_v12 = vand.u32 31, %v3093_v4  ;;  %550 = vmatpush1.msra.mxu1 %v439_v10  ;;  %s4627_s12 = sld [smem:[#allocation62_spill]]  ;;  %v912_v19 = vadd.s32 256, %v3093_v4  ;;  %v913_v20 = vadd.s32 384, %v3093_v4 }
  0x80   : > { %s4769_s21 = smov (!%p416_p12, %s4767_s21), 7  ;;  %2347 = vmatprep.subr.mxu1 %v2754_v2  ;;  %2336 = vmatprep.subr.mxu0 %v2754_v2  ;;  %v2764_v40 = vmov 6   ;;  %v2766_v42 = vmov 7   ;;  %v2767_v43 = vmov 8   ;;  %s2768_s3 = smov 66   ;;  %vm858_vm10 = vcmask 269312  }
  0x81   : > { %p418_p2 = scmp.lt.s32.totalorder %s4623_s27, 1  ;;  %v925_v13 = vand.u32 31, %v3096_v5  ;;  %vm974_vm1 = vcmp.le.s32.totalorder %v918_v12, 30  ;;  %v932_v26 = vand.u32 31, %v912_v19  ;;  %v939_v27 = vand.u32 31, %v913_v20  ;;  %s4632_s0 = sld [smem:[#allocation63_spill]] }
  0x82   : > { %v436_v8 = vld [vmem:[%s4624_s4 + $0x10] sm:$0xff]  ;;  %v2314_v21 = vsel %vm974_vm1, 1.0, %v2754_v2  ;;  %vm962_vm8 = vcmp.ge.s32.totalorder %v918_v12, 1  ;;  %v434_v44 = vld [vmem:[%s4624_s4] sm:$0xff]  ;;  %v435_v45 = vld [vmem:[%s4624_s4 + $0x8] sm:$0xff]  ;;  %s2769_s7 = smov 33  }
  0x83   : > { %s419_s5 = scalar_select %p418_p2, %s4623_s27, 1  ;;  %v3108_v11 = vld [vmem:[%s4625_s18] sm:$0xff]  ;;  %453 = vperm.xlu1 %2494, %v436_v8   ;;  %v3125_v15 = vld [vmem:[%s4625_s18 + $0x8] sm:$0xff]  ;;  %vm975_vm2 = vcmp.le.s32.totalorder %v925_v13, 30  ;;  %v3148_v18 = vld [vmem:[%s4625_s18 + $0x10] sm:$0xff]  ;;  %vm964_vm4 = vcmp.ge.s32.totalorder %v932_v26, 1 }
  0x84   : > { %2298 = vmatmul.mubr.msk.f32.vlgmr.msra.gmra.mrb[0].mxu0 %vm456_vm0, %v3108_v11  ;;  %2301 = vmatmul.mubr.msk.f32.vlgmr.msra.gmra.mrb[0].mxu1 %vm456_vm0, %v3108_v11  ;;  %v2315_v22 = vsel %vm975_vm2, 1.0, %v2754_v2  ;;  %vm965_vm5 = vcmp.ge.s32.totalorder %v939_v27, 1  ;;  %v3186_v30 = vsel %vm964_vm4, 1.0, %v2754_v2  ;;  %vm976_vm6 = vcmp.le.s32.totalorder %v932_v26, 30  ;;  %p636_p13 = scmp.lt.s32.totalorder %s2733_s30, 1  ;;  %p634_p10 = scmp.gt.s32.totalorder %s2733_s30, 0 }
  0x85   : > { %s2296_s22 = sshll.u32 %s419_s5, 3  ;;  %536 = vmatprep.mubr.f32.mxu0 %v2754_v2  ;;  %619 = vmatprep.mubr.f32.mxu1 %v2754_v2  ;;  %v3133_v17 = vld [vmem:[%s4627_s12 + $0x8] sm:$0xff]  ;;  %v3162_v23 = vld [vmem:[%s4627_s12] sm:$0xff]  ;;  %v3167_v25 = vpack.i.bf16 %v2315_v22, %v2314_v21  ;;  %v3180_v28 = vld [vmem:[%s4627_s12 + $0x10] sm:$0xff]  ;;  %4628 = vst [vmem:[#allocation16_spill] sm:$0xff] %v3186_v30  ;;  %v3189_v31 = vsel %vm965_vm5, 1.0, %v2754_v2 }
  0x86   : > { %s423_s24 = sadd.s32 %s2296_s22, %s4769_s21  ;;  %1045 = vperm.xlu0 %2496, %v3133_v17   ;;  %4629 = vst [vmem:[#allocation17_spill] sm:$0xff] %v3189_v31  ;;  %v2516_v32 = vpack.i.bf16 %v3189_v31, %v3186_v30  ;;  %vm977_vm7 = vcmp.le.s32.totalorder %v939_v27, 30  ;;  %v2316_v33 = vsel %vm976_vm6, 1.0, %v2754_v2  ;;  %vm963_vm9 = vcmp.ge.s32.totalorder %v925_v13, 1  ;;  %s2765_s21 = smov 64  }
  0x87   : > { %s2297_s14 = sshll.u32 %s423_s24, 3  ;;  %639 = vrot.lane.b32.xlu1 %v632_v14, %s2756_s13  ;;  %v2317_v34 = vsel %vm977_vm7, 1.0, %v2754_v2  ;;  %v3214_v38 = vsel %vm962_vm8, 1.0, %v2754_v2  ;;  %v3217_v39 = vsel %vm963_vm9, 1.0, %v2754_v2  ;;  %v2080_v46 = vld [vmem:[%s4632_s0 + $0x8] sm:$0xff]  ;;  %v2079_v47 = vld [vmem:[%s4632_s0] sm:$0xff] }
  0x88   : > { %s425_s5 = scalar_lea.vmem %s4626_s19, %s2297_s14  ;;  %2299 = vmatmul.mubr.msk.f32.gmra.mrb[2].mxu0 %vm456_vm0, %v3125_v15  ;;  %2302 = vmatmul.mubr.msk.f32.gmra.mrb[2].mxu1 %vm456_vm0, %v3125_v15  ;;  %s2759_s19 = smov 2   ;;  %v2504_v36 = vpack.i.bf16 %v2317_v34, %v2316_v33  ;;  %4630 = vst [vmem:[#allocation18_spill] sm:$0xff] %v3214_v38  ;;  %4631 = vst [vmem:[#allocation19_spill] sm:$0xff] %v3217_v39  ;;  %v2511_v41 = vpack.i.bf16 %v3217_v39, %v3214_v38  ;;  %v2081_v48 = vld [vmem:[%s4632_s0 + $0x10] sm:$0xff]  ;;  %vm1188_vm11 = vcmask 15360   ;;  %vm1333_vm12 = vcmask 261120  }
  0x89   : > { %v633_v16 = vld [vmem:[%s425_s5] sm:$0xff]  ;;  %542 = vmatprep.mubr.f32.mxu0 %v2754_v2  ;;  %625 = vmatprep.mubr.f32.mxu1 %v2754_v2  ;;  %s2763_s5 = smov 34   ;;  %s2770_s6 = smov 127   ;;  %vm1583_vm13 = vcmask 277504   ;;  %vm1724_vm14 = vcmask 523264   ;;  %vm1973_vm15 = vcmask 539648  }
  0x8a   : > { %2348 = vmatpush3.msra.mxu1 %v633_v16  ;;  %2497 = vset.pattern.permute.xlu0 %v2757_v24  ;;  %s637_s2 = scalar_select %p636_p13, 1.0, 0.0  ;;  %vm1112_vm1 = vcmask 1039360   ;;  %vm1257_vm2 = vcmask 1031168   ;;  %vm1511_vm4 = vcmask 777216   ;;  %vm1652_vm5 = vcmask 769024  }
  0x8b   : > { %996 = vperm.xlu1 %2494, %v3133_v17   ;;  %1150 = vperm.xlu0 %2497, %v3162_v23   ;;  %s2771_s24 = smov 95   ;;  %s2772_s14 = smov 1   ;;  %vm1901_vm6 = vcmask 515072   ;;  %vm2042_vm7 = vcmask 506880   ;;  %vm895_vm8 = vcmask 7168  }
  0x8c   : > { %2300 = vmatmul.mubr.msk.f32.gmra.mrb[4].mxu0 %vm456_vm0, %v3148_v18  ;;  %2303 = vmatmul.mubr.msk.f32.gmra.mrb[4].mxu1 %vm456_vm0, %v3148_v18  ;;  %s2773_s9 = smov 63   ;;  %s2776_s22 = smov 94  }
  0x8d   : > { %2349 = vmatprep.mubr.msk.f32.mxu1 %vm2758_vm3, %v2754_v2  ;;  %2338 = vmatprep.mubr.msk.f32.mxu0 %vm2758_vm3, %v2754_v2  ;;  %p4742_p3 = scmp.ne.s32.totalorder %s4605_s23, 0 }
  0x8f   : > { %2495 = vset.pattern.permute.xlu1 %v2755_v3  ;;  %2500 = vrot.lane.b32.xlu0 %v3167_v25, %s2759_s19 }
  0x90   : > { %1041 = vperm.xlu1 %2495, %v3162_v23   ;;  %2350 = vmatmul.mubr.msk.f32.vlgmr.msra.gmra.mrb[6].mxu1 %vm456_vm0, %v3108_v11 }
  0x91   : > { %2352 = vmatprep.mubr.msk.f32.mxu1 %vm2758_vm3, %v2754_v2  ;;  %2510 = vset.pattern.permute.xlu0 %v2760_v29 }
  0x93   : > { %1299 = vperm.xlu0 %2510, %v3133_v17  }
  0x94   : > { %1049 = vperm.xlu1 %2495, %v3180_v28   ;;  %2353 = vmatmul.mubr.msk.f32.gmra.mrb[8].mxu1 %vm456_vm0, %v3125_v15 }
  0x95   : > { %2355 = vmatprep.mubr.msk.f32.mxu1 %vm2758_vm3, %v2754_v2 }
  0x97   : > { %2517 = vrot.lane.b32.xlu0 %v2516_v32, %s2756_s13 }
  0x98   : > { %2498 = vset.pattern.permute.xlu1 %v2757_v24  ;;  %2356 = vmatmul.mubr.msk.f32.gmra.mrb[10].mxu1 %vm456_vm0, %v3148_v18 }
  0x99   : > { %1154 = vperm.xlu1 %2498, %v3133_v17   ;;  %2521 = vset.pattern.permute.xlu0 %v2761_v35 }
  0x9b   : > { %1440 = vperm.xlu0 %2521, %v3162_v23  }
  0x9d   : > { %1158 = vperm.xlu1 %2498, %v3180_v28  }
  0x9f   : > { %2524 = vset.pattern.permute.xlu0 %v2762_v37 }
  0xa0   : > { %1553 = vperm.xlu0 %2524, %v3133_v17  }
  0xa1   : > { %2505 = vrot.lane.b32.xlu1 %v2504_v36, %s2759_s19  ;;  %s2774_s19 = smov 126  }
  0xa2   : > { %2509 = vset.pattern.permute.xlu1 %v2760_v29 }
  0xa4   : > { %2531 = vrot.lane.b32.xlu0 %v2504_v36, %s2763_s5 }
  0xa5   : > { %1295 = vperm.xlu1 %2509, %v3162_v23   ;;  %2535 = vset.pattern.permute.xlu0 %v2764_v40 }
  0xa8   : > { %1690 = vperm.xlu0 %2535, %v3162_v23  }
  0xa9   : > { %1303 = vperm.xlu1 %2509, %v3180_v28  }
  0xac   : > { %2538 = vrot.lane.b32.xlu0 %v2511_v41, %s2765_s21 }
  0xad   : > { %2512 = vrot.lane.b32.xlu1 %v2511_v41, %s2756_s13  ;;  %2548 = vset.pattern.permute.xlu0 %v2766_v42 }
  0xae   : > { %2522 = vset.pattern.permute.xlu1 %v2761_v35 }
  0xb0   : > { %1834 = vperm.xlu0 %2548, %v3133_v17  }
  0xb1   : > { %1444 = vperm.xlu1 %2522, %v3133_v17  }
  0xb4   : > { %2550 = vset.pattern.permute.xlu0 %v2767_v43 }
  0xb5   : > { %1448 = vperm.xlu1 %2522, %v3180_v28   ;;  %1943 = vperm.xlu0 %2550, %v3133_v17  }
  0xb9   : > { %2523 = vset.pattern.permute.xlu1 %v2762_v37  ;;  %2551 = vset.pattern.permute.xlu0 %v2753_v1 }
  0xba   : > { %1549 = vperm.xlu1 %2523, %v3162_v23   ;;  %443 = vperm.xlu0 %2551, %v434_v44  }
  0xbe   : > { %1557 = vperm.xlu1 %2523, %v3180_v28   ;;  %448 = vperm.xlu0 %2551, %v435_v45  }
  0xc2   : > { %2526 = vrot.lane.b32.xlu1 %v3167_v25, %s2763_s5  ;;  %991 = vperm.xlu0 %2551, %v3162_v23   ;;  %s2775_s5 = smov 96  }
  0xc3   : > { %2536 = vset.pattern.permute.xlu1 %v2764_v40 }
  0xc6   : > { %1694 = vperm.xlu1 %2536, %v3133_v17   ;;  %1001 = vperm.xlu0 %2551, %v3180_v28  }
  0xca   : > { %1698 = vperm.xlu1 %2536, %v3180_v28   ;;  %2558 = vrot.lane.b32.xlu0 %v2504_v36, %s2768_s3 }
  0xce   : > { %2543 = vrot.lane.b32.xlu1 %v2516_v32, %s2765_s21  ;;  %2089 = vperm.xlu0 %2551, %v2080_v46  }
  0xcf   : > { %2547 = vset.pattern.permute.xlu1 %v2766_v42 }
  0xd2   : > { %1830 = vperm.xlu1 %2547, %v3162_v23  }
  0xd6   : > { %1838 = vperm.xlu1 %2547, %v3180_v28  }
  0xda   : > { %2549 = vset.pattern.permute.xlu1 %v2767_v43  ;;  %v806_v43 = vstv %s637_s2  ;;  %s2358_s2 = smul.u32 96, %s3066_s8 }
  0xdb   : > { %1939 = vperm.xlu1 %2549, %v3162_v23  }
  0xdf   : > { %1947 = vperm.xlu1 %2549, %v3180_v28  }
  0xe3   : > { %2553 = vrot.lane.b32.xlu1 %v3167_v25, %s2768_s3  ;;  %s635_s3 = scalar_select %p634_p10, 1.0, 0.0 }
  0xe4   : > { %2562 = vset.pattern.permute.xlu1 %v2753_v1 }
  0xe7   : > { %2084 = vperm.xlu1 %2562, %v2079_v47  }
  0xeb   : > { %2094 = vperm.xlu1 %2562, %v2081_v48  }
 0x102   : > { %v3259_v49 = vpop.permute.xlu1 %453 }
 0x105   : > { %v3269_v51 = vpop.permute.xlu0 %1045 }
 0x106   : > { %v640_v50 = vpop.permute.xlu1 %639 }
 0x107   : > { %2337 = vmatpush3.msra.mxu0 %v640_v50 }
 0x108   : > { %2339 = vmatmul.mubr.msk.f32.vlgmr.msra.gmra.mrb[6].mxu0 %vm456_vm0, %v3108_v11 }
 0x109   : > { %2341 = vmatprep.mubr.msk.f32.mxu0 %vm2758_vm3, %v2754_v2 }
 0x10a   : > { %v3273_v52 = vpop.permute.xlu0 %1150  ;;  %v3287_v59 = vpop.permute.xlu1 %996 }
 0x10b   : > { %4633 = vst [vmem:[#allocation20_spill] sm:$0xff] %v3273_v52  ;;  %4635 = vst [vmem:[#allocation22_spill] sm:$0xff] %v3287_v59 }
 0x10c   : > { %2342 = vmatmul.mubr.msk.f32.gmra.mrb[8].mxu0 %vm456_vm0, %v3125_v15 }
 0x10d   : > { %2344 = vmatprep.mubr.msk.f32.mxu0 %vm2758_vm3, %v2754_v2  ;;  %vm1402_vm3 = vcmask 785408  }
 0x10e   : > { %v3275_v53 = vpop.permute.xlu0 %2500 }
 0x10f   : > { %v3291_v61 = vpop.permute.xlu1 %1041 }
 0x110   : > { %2345 = vmatmul.mubr.msk.f32.gmra.mrb[10].mxu0 %vm456_vm0, %v3148_v18  ;;  %vm905_vm0 = vcmask 531456  }
 0x112   : > { %v3277_v54 = vpop.permute.xlu0 %1299 }
 0x113   : > { %v3295_v63 = vpop.permute.xlu1 %1049 }
 0x116   : > { %v3279_v55 = vpop.permute.xlu0 %2517 }
 0x117   : > { %v4650_v38 = vunpack.i.l.bf16 %v3279_v55 }
 0x118   : > { %v3299_v1 = vpop.permute.xlu1 %1154 }
 0x119   : > { %4636 = vst [vmem:[#allocation23_spill] sm:$0xff] %v3299_v1 }
 0x11a   : > { %v3281_v56 = vpop.permute.xlu0 %1440 }
 0x11b   : > { %4634 = vst [vmem:[#allocation21_spill] sm:$0xff] %v3281_v56 }
 0x11c   : > { %v3303_v3 = vpop.permute.xlu1 %1158 }
 0x11f   : > { %v3283_v57 = vpop.permute.xlu0 %1553 }
 0x120   : > { %v3311_v12 = vpop.permute.xlu1 %2505 }
 0x123   : > { %v3285_v58 = vpop.permute.xlu0 %2531 }
 0x124   : > { %v3321_v25 = vpop.permute.xlu1 %1295 }
 0x127   : > { %v3289_v60 = vpop.permute.xlu0 %1690 }
 0x128   : > { %v3330_v32 = vpop.permute.xlu1 %1303 }
 0x12b   : > { %v3293_v62 = vpop.permute.xlu0 %2538 }
 0x12c   : > { %v3340_v46 = vpop.permute.xlu1 %2512 }
 0x12f   : > { %v3297_v0 = vpop.permute.xlu0 %1834 }
 0x134   : > { %v3301_v2 = vpop.permute.xlu0 %1943 }
 0x139   : > { %v3305_v4 = vpop.permute.xlu0 %443 }
 0x13d   : > { %v3315_v18 = vpop.permute.xlu0 %448 }
 0x157   : > { %v532_v5 = vpop.f32.mrb[0].mxu0  ;;  %v615_v8 = vpop.f32.mrb[0].mxu1 }
 0x158   : > { %v533_v6 = vadd.f32 %v532_v5, %v3305_v4  ;;  %v534_v7 = vpop.f32.mrb[1].mxu0  ;;  %v617_v10 = vpop.f32.mrb[1].mxu1  ;;  %v616_v11 = vadd.f32 %v615_v8, %v3305_v4 }
 0x159   : > { %v535_v9 = vadd.f32 %v534_v7, %v3305_v4  ;;  %v618_v13 = vadd.f32 %v617_v10, %v3305_v4  ;;  %v3347_v5 = vpop.permute.xlu1 %1444 }
 0x15a   : > { %834 = vrot.lane.b32.xlu1 %v533_v6, %s2769_s7  ;;  %4637 = vst [vmem:[#allocation24_spill] sm:$0xff] %v3347_v5 }
 0x15b   : > { %836 = vrot.lane.b32.xlu0 %v535_v9, %s2769_s7  ;;  %v538_v14 = vpop.f32.mrb[2].mxu0  ;;  %v621_v15 = vpop.f32.mrb[2].mxu1 }
 0x15c   : > { %v540_v16 = vpop.f32.mrb[3].mxu0  ;;  %v623_v17 = vpop.f32.mrb[3].mxu1  ;;  %v539_v19 = vadd.f32 %v538_v14, %v3315_v18  ;;  %v622_v26 = vadd.f32 %v621_v15, %v3315_v18 }
 0x15d   : > { %v541_v21 = vadd.f32 %v540_v16, %v3315_v18  ;;  %v624_v27 = vadd.f32 %v623_v17, %v3315_v18  ;;  %v3350_v7 = vpop.permute.xlu1 %1448 }
 0x15e   : > { %838 = vrot.lane.b32.xlu1 %v616_v11, %s2769_s7 }
 0x15f   : > { %v544_v20 = vpop.f32.mrb[4].mxu0  ;;  %840 = vrot.lane.b32.xlu0 %v618_v13, %s2769_s7  ;;  %v627_v22 = vpop.f32.mrb[4].mxu1 }
 0x160   : > { %v546_v23 = vpop.f32.mrb[5].mxu0  ;;  %v629_v24 = vpop.f32.mrb[5].mxu1  ;;  %v545_v33 = vadd.f32 %v544_v20, %v3259_v49  ;;  %v628_v37 = vadd.f32 %v627_v22, %v3259_v49 }
 0x161   : > { %v547_v35 = vadd.f32 %v546_v23, %v3259_v49  ;;  %v630_v42 = vadd.f32 %v629_v24, %v3259_v49  ;;  %v3352_v8 = vpop.permute.xlu1 %1549  ;;  %v3372_v20 = vpop.permute.xlu0 %991 }
 0x162   : > { %842 = vrot.lane.b32.xlu1 %v539_v19, %s2769_s7  ;;  %4640 = vst [vmem:[#allocation27_spill] sm:$0xff] %v3372_v20 }
 0x163   : > { %844 = vrot.lane.b32.xlu0 %v541_v21, %s2769_s7  ;;  %v792_v28 = vpop.f32.mrb[6].mxu1 }
 0x164   : > { %v2351_v29 = vpop.f32.mrb[7].mxu1  ;;  %v793_v40 = vadd.f32 %v792_v28, %v3305_v4 }
 0x165   : > { %v3354_v9 = vpop.permute.xlu1 %1557  ;;  %v3376_v22 = vpop.permute.xlu0 %1001 }
 0x166   : > { %846 = vrot.lane.b32.xlu1 %v622_v26, %s2769_s7  ;;  %v807_v47 = vmul.f32 %v806_v43, %v793_v40  ;;  %4641 = vst [vmem:[#allocation28_spill] sm:$0xff] %v3376_v22 }
 0x167   : > { %848 = vrot.lane.b32.xlu0 %v624_v27, %s2769_s7  ;;  %v797_v34 = vpop.f32.mrb[8].mxu1 }
 0x168   : > { %v2354_v36 = vpop.f32.mrb[9].mxu1  ;;  %v798_v44 = vadd.f32 %v797_v34, %v3315_v18 }
 0x169   : > { %v3356_v10 = vpop.permute.xlu1 %2526  ;;  %v3380_v24 = vpop.permute.xlu0 %2558 }
 0x16a   : > { %850 = vrot.lane.b32.xlu1 %v545_v33, %s2769_s7  ;;  %v808_v50 = vmul.f32 %v806_v43, %v798_v44  ;;  %v722_v44 = vstv %s635_s3  ;;  %s4009_s3 = scalar_lea.vmem [#allocation7], %s2358_s2 }
 0x16b   : > { %852 = vrot.lane.b32.xlu0 %v547_v35, %s2769_s7  ;;  %v802_v41 = vpop.f32.mrb[10].mxu1 }
 0x16c   : > { %v2357_v45 = vpop.f32.mrb[11].mxu1  ;;  %v803_v48 = vadd.f32 %v802_v41, %v3259_v49 }
 0x16d   : > { %v3358_v11 = vpop.permute.xlu1 %1694  ;;  %v3384_v27 = vpop.permute.xlu0 %2089 }
 0x16e   : > { %854 = vrot.lane.b32.xlu1 %v628_v37, %s2769_s7  ;;  %v809_v6 = vmul.f32 %v806_v43, %v803_v48  ;;  %4638 = vst [vmem:[#allocation25_spill] sm:$0xff] %v3358_v11  ;;  %4644 = vst [vmem:[#allocation31_spill] sm:$0xff] %v3384_v27 }
 0x16f   : > { %856 = vrot.lane.b32.xlu0 %v630_v42, %s2769_s7 }
 0x171   : > { %v3360_v13 = vpop.permute.xlu1 %1698 }
 0x172   : > { %886 = vrot.lane.b32.xlu1 %v807_v47, %s2769_s7 }
 0x173   : > { %888 = vrot.lane.b32.xlu0 %v808_v50, %s2769_s7 }
 0x175   : > { %v3362_v14 = vpop.permute.xlu1 %2543 }
 0x176   : > { %890 = vrot.lane.b32.xlu1 %v809_v6, %s2769_s7  ;;  %s2777_s7 = smov 62  }
 0x179   : > { %v3364_v15 = vpop.permute.xlu1 %1830 }
 0x17d   : > { %v3366_v16 = vpop.permute.xlu1 %1838 }
 0x181   : > { %v3368_v17 = vpop.permute.xlu1 %1939 }
 0x185   : > { %v3370_v19 = vpop.permute.xlu1 %1947 }
 0x186   : > { %4639 = vst [vmem:[#allocation26_spill] sm:$0xff] %v3370_v19 }
 0x189   : > { %v3374_v21 = vpop.permute.xlu1 %2553 }
 0x18a   : > { %v3545_v30 = vunpack.i.l.bf16 %v3374_v21 }
 0x18c   : > { %4659 = vst [vmem:[#allocation43_spill] sm:$0xff] %v3545_v30 }
 0x18d   : > { %v3378_v23 = vpop.permute.xlu1 %2084 }
 0x18e   : > { %4642 = vst [vmem:[#allocation29_spill] sm:$0xff] %v3378_v23  ;;  %v3504_v23 = vunpack.i.h.bf16 %v3362_v14 }
 0x190   : > { %4655 = vst [vmem:[#allocation40_spill] sm:$0xff] %v3504_v23 }
 0x191   : > { %v3382_v26 = vpop.permute.xlu1 %2094 }
 0x192   : > { %4643 = vst [vmem:[#allocation30_spill] sm:$0xff] %v3382_v26 }
 0x1cc   : > { %v3386_v28 = vpop.permute.xlu1 %834 }
 0x1cd   : > { %4645 = vst [vmem:[#allocation32_spill] sm:$0xff] %v3386_v28  ;;  %v837_v29 = vpop.permute.xlu0 %836 }
 0x1ce   : > { %v3395_v36 = vsel %vm858_vm10, %v3386_v28, %v837_v29  ;;  %v3501_v28 = vunpack.i.l.bf16 %v3340_v46 }
 0x1cf   : > { %4646 = vst [vmem:[#allocation33_spill] sm:$0xff] %v3395_v36  ;;  %v1452_v40 = vmul.f32 %v3281_v56, %v3395_v36  ;;  %v1842_v31 = vmul.f32 %v3364_v15, %v3395_v36  ;;  %v1702_v59 = vmul.f32 %v3289_v60, %v3395_v36 }
 0x1d0   : > { %v839_v33 = vpop.permute.xlu1 %838  ;;  %4654 = vst [vmem:[#allocation39_spill] sm:$0xff] %v3501_v28 }
 0x1d1   : > { %v3389_v34 = vsel %vm858_vm10, %v837_v29, %v839_v33  ;;  %v3398_v37 = vpop.permute.xlu0 %840 }
 0x1d2   : > { %v1054_v35 = vmul.f32 %v3291_v61, %v3389_v34  ;;  %v3405_v41 = vsel %vm858_vm10, %v839_v33, %v3398_v37  ;;  %v1843_v50 = vmul.f32 %v3364_v15, %v3389_v34  ;;  %v1562_v22 = vmul.f32 %v3352_v8, %v3389_v34 }
 0x1d3   : > { %4647 = vst [vmem:[#allocation34_spill] sm:$0xff] %v3405_v41  ;;  %v1454_v42 = vmul.f32 %v3281_v56, %v3405_v41 }
 0x1d4   : > { %1086 = vrot.lane.b32.xlu1 %v1054_v35, %s2770_s6  ;;  %v2503_v35 = vunpack.i.h.bf16 %v3275_v53 }
 0x1d8   : > { %1483 = vrot.lane.b32.xlu1 %v1452_v40, %s2771_s24 }
 0x1db   : > { %v708_v43 = vpop.f32.mrb[6].mxu0 }
 0x1dc   : > { %v709_v45 = vadd.f32 %v708_v43, %v3305_v4  ;;  %1487 = vrot.lane.b32.xlu1 %v1454_v42, %s2771_s24  ;;  %v2340_v47 = vpop.f32.mrb[7].mxu0  ;;  %v3419_v4 = vunpack.i.l.bf16 %v3275_v53  ;;  %v1053_v42 = vmul.f32 %v3291_v61, %v3395_v36  ;;  %v1162_v43 = vmul.f32 %v3273_v52, %v3395_v36  ;;  %v3431_v53 = vpop.permute.xlu1 %842 }
 0x1de   : > { %v723_v48 = vmul.f32 %v722_v44, %v709_v45  ;;  %4648 = vst [vmem:[#allocation35_spill] sm:$0xff] %v3419_v4 }
 0x1df   : > { %v713_v6 = vpop.f32.mrb[8].mxu0 }
 0x1e0   : > { %v714_v29 = vadd.f32 %v713_v6, %v3315_v18  ;;  %813 = vrot.lane.b32.xlu0 %v723_v48, %s2772_s14  ;;  %1875 = vrot.lane.b32.xlu1 %v1843_v50, %s2773_s9  ;;  %v2343_v33 = vpop.f32.mrb[9].mxu0  ;;  %v3429_v48 = vunpack.i.h.bf16 %v3311_v12  ;;  %v3433_v50 = vpop.permute.xlu0 %844  ;;  %v3437_v6 = vsel %vm1188_vm11, %v3419_v4, %v2503_v35 }
 0x1e1   : > { %v1198_v33 = vmul.f32 %v3437_v6, %v1162_v43  ;;  %v1453_v43 = vmul.f32 %v3281_v56, %v3389_v34 }
 0x1e2   : > { %v724_v40 = vmul.f32 %v722_v44, %v714_v29  ;;  %4649 = vst [vmem:[#allocation36_spill] sm:$0xff] %v3429_v48 }
 0x1e3   : > { %v718_v18 = vpop.f32.mrb[10].mxu0 }
 0x1e4   : > { %v719_v45 = vadd.f32 %v718_v18, %v3259_v49  ;;  %1084 = vrot.lane.b32.xlu0 %v1053_v42, %s2770_s6  ;;  %815 = vrot.lane.b32.xlu1 %v724_v40, %s2772_s14  ;;  %v2346_v47 = vpop.f32.mrb[11].mxu0  ;;  %v1055_v49 = vmul.f32 %v3291_v61, %v3405_v41  ;;  %v1164_v40 = vmul.f32 %v3273_v52, %v3405_v41  ;;  %v2507_v42 = vunpack.i.l.bf16 %v3311_v12 }
 0x1e5   : > { %v2515_v18 = vunpack.i.h.bf16 %v3340_v46  ;;  %v1308_v12 = vmul.f32 %v3321_v25, %v3389_v34  ;;  %v1307_v46 = vmul.f32 %v3321_v25, %v3395_v36 }
 0x1e6   : > { %v3439_v29 = vmul.f32 %v722_v44, %v719_v45  ;;  %v3453_v45 = vsel %vm1188_vm11, %v2507_v42, %v3429_v48  ;;  %v4539_v44 = vunpack.i.l.bf16 %v3285_v58 }
 0x1e7   : > { %v1200_v47 = vmul.f32 %v3453_v45, %v1164_v40  ;;  %v3471_v40 = vsel %vm1333_vm12, %v2515_v18, %v4650_v38 }
 0x1e8   : > { %1088 = vrot.lane.b32.xlu0 %v1055_v49, %s2770_s6  ;;  %1229 = vrot.lane.b32.xlu1 %v1198_v33, %s2774_s19  ;;  %v3460_v49 = vpop.permute.xlu1 %846  ;;  %v3462_v33 = vpop.permute.xlu0 %848  ;;  %v1344_v27 = vmul.f32 %v3471_v40, %v1308_v12  ;;  %v4653_v12 = vunpack.i.h.bf16 %v3356_v10 }
 0x1ea   : > { %v3491_v4 = vsel %vm1583_vm13, %v4653_v12, %v4539_v44  ;;  %v3509_v12 = vsel %vm1188_vm11, %v2503_v35, %v2507_v42  ;;  %v3525_v35 = vunpack.i.h.bf16 %v3279_v55 }
 0x1ec   : > { %1485 = vrot.lane.b32.xlu0 %v1453_v43, %s2771_s24  ;;  %1233 = vrot.lane.b32.xlu1 %v1200_v47, %s2774_s19  ;;  %v3482_v47 = vunpack.i.l.bf16 %v3293_v62  ;;  %v3484_v38 = vpop.permute.xlu1 %850  ;;  %v853_v26 = vpop.permute.xlu0 %852  ;;  %v1163_v43 = vmul.f32 %v3273_v52, %v3389_v34  ;;  %v2545_v52 = vunpack.i.l.bf16 %v3362_v14  ;;  %v2560_v14 = vunpack.i.l.bf16 %v3380_v24 }
 0x1ed   : > { %4652 = vst [vmem:[#allocation38_spill] sm:$0xff] %v3484_v38 }
 0x1ee   : > { %4651 = vst [vmem:[#allocation37_spill] sm:$0xff] %v3482_v47  ;;  %v1199_v48 = vmul.f32 %v3509_v12, %v1163_v43  ;;  %v2556_v43 = vunpack.i.h.bf16 %v3374_v21 }
 0x1f0   : > { %1873 = vrot.lane.b32.xlu0 %v1842_v31, %s2773_s9  ;;  %1376 = vrot.lane.b32.xlu1 %v1344_v27, %s2775_s5  ;;  %v1844_v31 = vmul.f32 %v3364_v15, %v3405_v41  ;;  %v1594_v27 = vmul.f32 %v3491_v4, %v1562_v22  ;;  %v4656_v22 = vunpack.i.h.bf16 %v3293_v62  ;;  %v855_v42 = vpop.permute.xlu1 %854  ;;  %v3527_v56 = vpop.permute.xlu0 %856  ;;  %v3596_v39 = vsel %vm1973_vm15, %v2556_v43, %v2560_v14 }
 0x1f1   : > { %4657 = vst [vmem:[#allocation41_spill] sm:$0xff] %v3527_v56  ;;  %v3562_v21 = vsel %vm858_vm10, %v853_v26, %v855_v42 }
 0x1f2   : > { %v3515_v44 = vsel %vm1724_vm14, %v3482_v47, %v4656_v22  ;;  %v3531_v22 = vsel %vm1333_vm12, %v3501_v28, %v2515_v18  ;;  %v3534_v47 = vunpack.i.h.bf16 %v3380_v24  ;;  %v1951_v28 = vmul.f32 %v3368_v17, %v3395_v36  ;;  %4662 = vst [vmem:[#allocation46_spill] sm:$0xff] %v3562_v21 }
 0x1f3   : > { %v1343_v18 = vmul.f32 %v3531_v22, %v1307_v46  ;;  %v3552_v24 = vsel %vm858_vm10, %v3484_v38, %v853_v26  ;;  %v3565_v46 = vunpack.i.l.bf16 %v3356_v10  ;;  %v4663_v38 = vunpack.i.l.bf16 %v3279_v55 }
 0x1f4   : > { %1877 = vrot.lane.b32.xlu0 %v1844_v31, %s2773_s9  ;;  %1626 = vrot.lane.b32.xlu1 %v1594_v27, %s2776_s22  ;;  %v1734_v31 = vmul.f32 %v3515_v44, %v1702_v59  ;;  %v1704_v27 = vmul.f32 %v3289_v60, %v3405_v41  ;;  %4658 = vst [vmem:[#allocation42_spill] sm:$0xff] %v3534_v47  ;;  %4660 = vst [vmem:[#allocation44_spill] sm:$0xff] %v3552_v24 }
 0x1f5   : > { %v3541_v59 = vsel %vm1724_vm14, %v2545_v52, %v3504_v23  ;;  %v1309_v23 = vmul.f32 %v3321_v25, %v3405_v41  ;;  %v3581_v26 = vsel %vm1973_vm15, %v3545_v30, %v2556_v43  ;;  %v1962_v30 = vmul.f32 %v3370_v19, %v3562_v21 }
 0x1f8   : > { %1231 = vrot.lane.b32.xlu0 %v1199_v48, %s2774_s19  ;;  %1765 = vrot.lane.b32.xlu1 %v1734_v31, %s2765_s21  ;;  %v3556_v48 = vsel %vm858_vm10, %v855_v42, %v3527_v56  ;;  %v1736_v31 = vmul.f32 %v3541_v59, %v1704_v27  ;;  %v3573_v56 = vsel %vm1333_vm12, %v4663_v38, %v3525_v35 }
 0x1f9   : > { %4661 = vst [vmem:[#allocation45_spill] sm:$0xff] %v3556_v48  ;;  %v3577_v27 = vsel %vm1973_vm15, %v2560_v14, %v3534_v47  ;;  %v1561_v42 = vmul.f32 %v3352_v8, %v3395_v36  ;;  %v1963_v55 = vmul.f32 %v3370_v19, %v3556_v48  ;;  %v1345_v38 = vmul.f32 %v3573_v56, %v1309_v23 }
 0x1fa   : > { %v1953_v47 = vmul.f32 %v3368_v17, %v3405_v41  ;;  %v3607_v23 = vmul.f32 %v3596_v39, %v1962_v30  ;;  %v4667_v14 = vunpack.i.h.bf16 %v3356_v10  ;;  %v3625_v30 = vsel %vm858_vm10, %v3431_v53, %v3433_v50 }
 0x1fb   : > { %v3602_v36 = vmul.f32 %v3577_v27, %v1963_v55  ;;  %v4668_v10 = vunpack.i.l.bf16 %v3285_v58 }
 0x1fc   : > { %1374 = vrot.lane.b32.xlu0 %v1343_v18, %s2775_s5  ;;  %1769 = vrot.lane.b32.xlu1 %v1736_v31, %s2765_s21  ;;  %v1961_v18 = vmul.f32 %v3370_v19, %v3552_v24  ;;  %v1983_v31 = vmul.f32 %v3581_v26, %v1951_v28  ;;  %4666 = vst [vmem:[#allocation49_spill] sm:$0xff] %v3607_v23  ;;  %v3610_v28 = vunpack.i.h.bf16 %v3285_v58  ;;  %v4670_v58 = vunpack.i.h.bf16 %v3293_v62 }
 0x1fd   : > { %4665 = vst [vmem:[#allocation48_spill] sm:$0xff] %v3602_v36  ;;  %v3616_v43 = vsel %vm1583_vm13, %v3565_v46, %v4667_v14  ;;  %v1985_v55 = vmul.f32 %v3577_v27, %v1953_v47  ;;  %v1703_v14 = vmul.f32 %v3289_v60, %v3389_v34  ;;  %v3660_v19 = vsel %vm858_vm10, %v3433_v50, %v3460_v49  ;;  %v4677_v36 = vld [vmem:[#allocation33_spill] sm:$0xff] }
 0x1fe   : > { %v3599_v20 = vmul.f32 %v3581_v26, %v1961_v18  ;;  %v1593_v18 = vmul.f32 %v3616_v43, %v1561_v42  ;;  %v1058_v42 = vmul.f32 %v3269_v51, %v3625_v30  ;;  %v1458_v62 = vmul.f32 %v3347_v5, %v3660_v19 }
 0x1ff   : > { %v1847_v50 = vmul.f32 %v3297_v0, %v3625_v30 }
 0x200   : > { %4664 = vst [vmem:[#allocation47_spill] sm:$0xff] %v3599_v20  ;;  %1378 = vrot.lane.b32.xlu0 %v1345_v38, %s2775_s5  ;;  %2014 = vrot.lane.b32.xlu1 %v1983_v31, %s2777_s7  ;;  %v1563_v38 = vmul.f32 %v3352_v8, %v3405_v41  ;;  %v3633_v31 = vsel %vm1583_vm13, %v4668_v10, %v3610_v28  ;;  %v4678_v20 = vld [vmem:[#allocation27_spill] sm:$0xff] }
 0x201   : > { %v1952_v41 = vmul.f32 %v3368_v17, %v3389_v34 }
 0x202   : > { %v1595_v47 = vmul.f32 %v3633_v31, %v1563_v38 }
 0x204   : > { %1624 = vrot.lane.b32.xlu0 %v1593_v18, %s2776_s22  ;;  %2018 = vrot.lane.b32.xlu1 %v1985_v55, %s2777_s7  ;;  %v3643_v18 = vsel %vm858_vm10, %v3460_v49, %v3462_v33  ;;  %v3650_v55 = vsel %vm1724_vm14, %v4670_v58, %v2545_v52  ;;  %v1984_v52 = vmul.f32 %v3596_v39, %v1952_v41 }
 0x205   : > { %4669 = vst [vmem:[#allocation50_spill] sm:$0xff] %v3643_v18  ;;  %v1735_v38 = vmul.f32 %v3650_v55, %v1703_v14  ;;  %v1060_v10 = vmul.f32 %v3269_v51, %v3643_v18  ;;  %v1457_v41 = vmul.f32 %v3347_v5, %v3625_v30  ;;  %v1849_v49 = vmul.f32 %v3297_v0, %v3643_v18 }
 0x206   : > { %v1459_v14 = vmul.f32 %v3347_v5, %v3643_v18 }
 0x208   : > { %1628 = vrot.lane.b32.xlu0 %v1595_v47, %s2776_s22  ;;  %1094 = vrot.lane.b32.xlu1 %v1058_v42, %s2770_s6  ;;  %v1059_v47 = vmul.f32 %v3269_v51, %v3660_v19  ;;  %v1168_v42 = vmul.f32 %v3299_v1, %v3660_v19 }
 0x20a   : > { %v1204_v58 = vmul.f32 %v3509_v12, %v1168_v42 }
 0x20c   : > { %1767 = vrot.lane.b32.xlu0 %v1735_v38, %s2765_s21  ;;  %1098 = vrot.lane.b32.xlu1 %v1060_v10, %s2770_s6  ;;  %v1312_v38 = vmul.f32 %v3277_v54, %v3625_v30  ;;  %v1848_v10 = vmul.f32 %v3297_v0, %v3660_v19 }
 0x210   : > { %2016 = vrot.lane.b32.xlu0 %v1984_v52, %s2777_s7  ;;  %1495 = vrot.lane.b32.xlu1 %v1458_v62, %s2771_s24  ;;  %v1348_v52 = vmul.f32 %v3531_v22, %v1312_v38  ;;  %v1314_v62 = vmul.f32 %v3277_v54, %v3643_v18 }
 0x214   : > { %1096 = vrot.lane.b32.xlu0 %v1059_v47, %s2770_s6  ;;  %1883 = vrot.lane.b32.xlu1 %v1847_v50, %s2773_s9  ;;  %v1350_v47 = vmul.f32 %v3573_v56, %v1314_v62  ;;  %v1167_v50 = vmul.f32 %v3299_v1, %v3625_v30 }
 0x218   : > { %1493 = vrot.lane.b32.xlu0 %v1457_v41, %s2771_s24  ;;  %1887 = vrot.lane.b32.xlu1 %v1849_v49, %s2773_s9  ;;  %v1566_v41 = vmul.f32 %v3283_v57, %v3625_v30  ;;  %v1203_v49 = vmul.f32 %v3437_v6, %v1167_v50  ;;  %v1567_v50 = vmul.f32 %v3283_v57, %v3660_v19 }
 0x21a   : > { %v1598_v42 = vmul.f32 %v3616_v43, %v1566_v41  ;;  %v1957_v41 = vmul.f32 %v3301_v2, %v3660_v19 }
 0x21c   : > { %1497 = vrot.lane.b32.xlu0 %v1459_v14, %s2771_s24  ;;  %1241 = vrot.lane.b32.xlu1 %v1204_v58, %s2774_s19  ;;  %v1169_v14 = vmul.f32 %v3299_v1, %v3643_v18  ;;  %v1568_v58 = vmul.f32 %v3283_v57, %v3643_v18 }
 0x21e   : > { %v1205_v38 = vmul.f32 %v3453_v45, %v1169_v14  ;;  %v1707_v14 = vmul.f32 %v3358_v11, %v3625_v30 }
 0x220   : > { %1885 = vrot.lane.b32.xlu0 %v1848_v10, %s2773_s9  ;;  %1384 = vrot.lane.b32.xlu1 %v1348_v52, %s2775_s5  ;;  %v1313_v10 = vmul.f32 %v3277_v54, %v3660_v19  ;;  %v1708_v52 = vmul.f32 %v3358_v11, %v3660_v19 }
 0x222   : > { %v1349_v62 = vmul.f32 %v3471_v40, %v1313_v10  ;;  %v1462_v10 = vmul.f32 %v3350_v7, %v3552_v24 }
 0x224   : > { %817 = vrot.lane.b32.xlu0 %v3439_v29, %s2772_s14  ;;  %1388 = vrot.lane.b32.xlu1 %v1350_v47, %s2775_s5  ;;  %v1600_v29 = vmul.f32 %v3633_v31, %v1568_v58  ;;  %v1740_v47 = vmul.f32 %v3650_v55, %v1708_v52  ;;  %v1739_v58 = vmul.f32 %v3515_v44, %v1707_v14 }
 0x225   : > { %v1956_v52 = vmul.f32 %v3301_v2, %v3625_v30  ;;  %v1853_v14 = vmul.f32 %v3366_v16, %v3562_v21 }
 0x228   : > { %1239 = vrot.lane.b32.xlu0 %v1203_v49, %s2774_s19  ;;  %1634 = vrot.lane.b32.xlu1 %v1598_v42, %s2776_s22  ;;  %v1599_v49 = vmul.f32 %v3491_v4, %v1567_v50  ;;  %v1989_v42 = vmul.f32 %v3596_v39, %v1957_v41  ;;  %v1464_v50 = vmul.f32 %v3350_v7, %v3556_v48 }
 0x229   : > { %v1958_v41 = vmul.f32 %v3301_v2, %v3643_v18 }
 0x22c   : > { %1243 = vrot.lane.b32.xlu0 %v1205_v38, %s2774_s19  ;;  %1638 = vrot.lane.b32.xlu1 %v1600_v29, %s2776_s22  ;;  %v1064_v38 = vmul.f32 %v3295_v63, %v3562_v21  ;;  %v1709_v29 = vmul.f32 %v3358_v11, %v3643_v18 }
 0x22e   : > { %v1741_v39 = vmul.f32 %v3541_v59, %v1709_v29 }
 0x230   : > { %1386 = vrot.lane.b32.xlu0 %v1349_v62, %s2775_s5  ;;  %1777 = vrot.lane.b32.xlu1 %v1740_v47, %s2765_s21  ;;  %v887_v62 = vpop.permute.xlu1 %886  ;;  %v1988_v47 = vmul.f32 %v3581_v26, %v1956_v52  ;;  %v1172_v26 = vmul.f32 %v3303_v3, %v3552_v24 }
 0x232   : > { %v1208_v29 = vmul.f32 %v3437_v6, %v1172_v26  ;;  %v889_v6 = vpop.permute.xlu0 %888 }
 0x233   : > { %v903_v23 = vsel %vm858_vm10, %v3462_v33, %v889_v6  ;;  %v1005_v33 = vmul.f32 %v4678_v20, %v4677_v36  ;;  %v1006_v6 = vmul.f32 %v4678_v20, %v3389_v34 }
 0x234   : > { %1636 = vrot.lane.b32.xlu0 %v1599_v49, %s2776_s22  ;;  %2026 = vrot.lane.b32.xlu1 %v1989_v42, %s2777_s7  ;;  %v3756_v49 = vpop.permute.xlu1 %890  ;;  %v1990_v42 = vmul.f32 %v3577_v27, %v1958_v41  ;;  %v1174_v27 = vmul.f32 %v3303_v3, %v3556_v48  ;;  %v1463_v41 = vmul.f32 %v3350_v7, %v3562_v21 }
 0x236   : > { %v1210_v52 = vmul.f32 %v3453_v45, %v1174_v27  ;;  %v1712_v27 = vmul.f32 %v3360_v13, %v3552_v24 }
 0x238   : > { %1775 = vrot.lane.b32.xlu0 %v1739_v58, %s2765_s21  ;;  %1106 = vrot.lane.b32.xlu1 %v1064_v38, %s2770_s6  ;;  %v1063_v38 = vmul.f32 %v3295_v63, %v3552_v24 }
 0x23c   : > { %1779 = vrot.lane.b32.xlu0 %v1741_v39, %s2765_s21  ;;  %1503 = vrot.lane.b32.xlu1 %v1462_v10, %s2771_s24  ;;  %v1065_v10 = vmul.f32 %v3295_v63, %v3556_v48 }
 0x240   : > { %2024 = vrot.lane.b32.xlu0 %v1988_v47, %s2777_s7  ;;  %1507 = vrot.lane.b32.xlu1 %v1464_v50, %s2771_s24  ;;  %v1318_v47 = vmul.f32 %v3330_v32, %v3562_v21 }
 0x244   : > { %2028 = vrot.lane.b32.xlu0 %v1990_v42, %s2777_s7  ;;  %1895 = vrot.lane.b32.xlu1 %v1853_v14, %s2773_s9  ;;  %v1354_v42 = vmul.f32 %v3471_v40, %v1318_v47  ;;  %v1572_v14 = vmul.f32 %v3354_v9, %v3562_v21  ;;  %v1744_v47 = vmul.f32 %v3515_v44, %v1712_v27 }
 0x245   : > { %v1317_v27 = vmul.f32 %v3330_v32, %v3552_v24 }
 0x246   : > { %v3765_v58 = vpop.permute.xlu1 %1086 }
 0x248   : > { %1104 = vrot.lane.b32.xlu0 %v1063_v38, %s2770_s6  ;;  %1249 = vrot.lane.b32.xlu1 %v1208_v29, %s2774_s19  ;;  %v1852_v38 = vmul.f32 %v3366_v16, %v3552_v24  ;;  %v1604_v29 = vmul.f32 %v3491_v4, %v1572_v14  ;;  %v1714_v4 = vmul.f32 %v3360_v13, %v3556_v48 }
 0x24a   : > { %v3774_v39 = vpop.permute.xlu1 %1483 }
 0x24b   : > { %4671 = vst [vmem:[#allocation51_spill] sm:$0xff] %v3774_v39 }
 0x24c   : > { %1108 = vrot.lane.b32.xlu0 %v1065_v10, %s2770_s6  ;;  %1253 = vrot.lane.b32.xlu1 %v1210_v52, %s2774_s19  ;;  %v1854_v52 = vmul.f32 %v3366_v16, %v3556_v48 }
 0x24e   : > { %v3783_v50 = vpop.permute.xlu1 %1487 }
 0x250   : > { %1505 = vrot.lane.b32.xlu0 %v1463_v41, %s2771_s24  ;;  %1396 = vrot.lane.b32.xlu1 %v1354_v42, %s2775_s5  ;;  %v1173_v41 = vmul.f32 %v3303_v3, %v3562_v21  ;;  %v902_v42 = vsel %vm858_vm10, %v3398_v37, %v887_v62 }
 0x251   : > { %v3827_v18 = vsel %vm905_vm0, %v902_v42, 0.0 }
 0x252   : > { %v3792_v45 = vpop.permute.xlu0 %813  ;;  %v3794_v26 = vpop.permute.xlu1 %1875  ;;  %v1209_v44 = vmul.f32 %v3509_v12, %v1173_v41  ;;  %v1056_v12 = vmul.f32 %v3291_v61, %v3827_v18  ;;  %v1845_v42 = vmul.f32 %v3364_v15, %v3827_v18 }
 0x254   : > { %1893 = vrot.lane.b32.xlu0 %v1852_v38, %s2773_s9  ;;  %1646 = vrot.lane.b32.xlu1 %v1604_v29, %s2776_s22  ;;  %v1746_v29 = vmul.f32 %v3541_v59, %v1714_v4  ;;  %v1319_v59 = vmul.f32 %v3330_v32, %v3556_v48 }
 0x256   : > { %v3803_v40 = vpop.permute.xlu0 %1084  ;;  %v3805_v10 = vpop.permute.xlu1 %815  ;;  %v1355_v4 = vmul.f32 %v3573_v56, %v1319_v59  ;;  %v1564_v59 = vmul.f32 %v3352_v8, %v3827_v18 }
 0x257   : > { %4672 = vst [vmem:[#allocation52_spill] sm:$0xff] %v3803_v40  ;;  %v1114_v34 = vsel %vm1112_vm1, %v3803_v40, %v3765_v58 }
 0x258   : > { %1897 = vrot.lane.b32.xlu0 %v1854_v52, %s2773_s9  ;;  %1785 = vrot.lane.b32.xlu1 %v1744_v47, %s2765_s21  ;;  %v1353_v52 = vmul.f32 %v3531_v22, %v1317_v27  ;;  %v1571_v22 = vmul.f32 %v3354_v9, %v3552_v24  ;;  %v4686_v24 = vld [vmem:[#allocation20_spill] sm:$0xff] }
 0x25a   : > { %v3818_v14 = vpop.permute.xlu0 %1088  ;;  %v3820_v38 = vpop.permute.xlu1 %1229 }
 0x25b   : > { %4673 = vst [vmem:[#allocation53_spill] sm:$0xff] %v3818_v14  ;;  %4674 = vst [vmem:[#allocation54_spill] sm:$0xff] %v3820_v38 }
 0x25c   : > { %1251 = vrot.lane.b32.xlu0 %v1209_v44, %s2774_s19  ;;  %1789 = vrot.lane.b32.xlu1 %v1746_v29, %s2765_s21  ;;  %v1310_v44 = vmul.f32 %v3321_v25, %v3827_v18 }
 0x25e   : > { %v3831_v37 = vpop.permute.xlu0 %1485  ;;  %v3833_v62 = vpop.permute.xlu1 %1233  ;;  %v1346_v56 = vmul.f32 %v3525_v35, %v1310_v44  ;;  %v1713_v44 = vmul.f32 %v3360_v13, %v3562_v21  ;;  %v4685_v21 = vld [vmem:[#allocation36_spill] sm:$0xff] }
 0x260   : > { %1394 = vrot.lane.b32.xlu0 %v1353_v52, %s2775_s5  ;;  %1090 = vrot.lane.b32.xlu1 %v1056_v12, %s2770_s6  ;;  %v1603_v52 = vmul.f32 %v3616_v43, %v1571_v22  ;;  %v1573_v12 = vmul.f32 %v3354_v9, %v3556_v48  ;;  %v1596_v22 = vmul.f32 %v3610_v28, %v1564_v59  ;;  %v3874_v48 = vsel %vm905_vm0, %v903_v23, 0.0 }
 0x261   : > { %v1460_v23 = vmul.f32 %v3347_v5, %v3874_v48  ;;  %v1170_v36 = vmul.f32 %v3299_v1, %v3874_v48  ;;  %v1165_v1 = vmul.f32 %v4686_v24, %v3827_v18 }
 0x262   : > { %v3842_v47 = vpop.permute.xlu0 %1873  ;;  %v1377_v41 = vpop.permute.xlu1 %1376  ;;  %v1605_v43 = vmul.f32 %v3633_v31, %v1573_v12  ;;  %v4680_v12 = vld [vmem:[#allocation19_spill] sm:$0xff] }
 0x263   : > { %4675 = vst [vmem:[#allocation55_spill] sm:$0xff] %v3842_v47  ;;  %v1017_v59 = vmul.f32 %v4680_v12, %v1005_v33  ;;  %v4684_v33 = vld [vmem:[#allocation21_spill] sm:$0xff] }
 0x264   : > { %1398 = vrot.lane.b32.xlu0 %v1355_v4, %s2775_s5  ;;  %1879 = vrot.lane.b32.xlu1 %v1845_v42, %s2773_s9 }
 0x266   : > { %v3853_v29 = vpop.permute.xlu0 %1877  ;;  %v3855_v27 = vpop.permute.xlu1 %1626 }
 0x268   : > { %1644 = vrot.lane.b32.xlu0 %v1603_v52, %s2776_s22  ;;  %1380 = vrot.lane.b32.xlu1 %v1346_v56, %s2775_s5  ;;  %v1745_v56 = vmul.f32 %v3650_v55, %v1713_v44  ;;  %v1115_v55 = vsel %vm1112_vm1, %v3765_v58, %v3818_v14  ;;  %v1138_v14 = vadd.f32 %v1114_v34, %v1017_v59 }
 0x26a   : > { %v1232_v4 = vpop.permute.xlu0 %1231  ;;  %v3867_v42 = vpop.permute.xlu1 %1765 }
 0x26b   : > { %4676 = vst [vmem:[#allocation56_spill] sm:$0xff] %v3867_v42  ;;  %v1259_v40 = vsel %vm1257_vm2, %v3820_v38, %v1232_v4  ;;  %v1260_v58 = vsel %vm1257_vm2, %v1232_v4, %v3833_v62  ;;  %v1959_v38 = vmul.f32 %v3301_v2, %v3874_v48 }
 0x26c   : > { %1648 = vrot.lane.b32.xlu0 %v1605_v43, %s2776_s22  ;;  %1630 = vrot.lane.b32.xlu1 %v1596_v22, %s2776_s22  ;;  %v4681_v43 = vld [vmem:[#allocation16_spill] sm:$0xff]  ;;  %v1283_v5 = vadd.f32 %v1259_v40, %v1138_v14 }
 0x26d   : > { %v1018_v22 = vmul.f32 %v4681_v43, %v1006_v6  ;;  %v1710_v6 = vmul.f32 %v3358_v11, %v3874_v48  ;;  %v1705_v11 = vmul.f32 %v3289_v60, %v3827_v18 }
 0x26e   : > { %v3882_v31 = vpop.permute.xlu0 %1374  ;;  %v3884_v52 = vpop.permute.xlu1 %1769 }
 0x26f   : > { %4679 = vst [vmem:[#allocation33_spill] sm:$0xff] %v3882_v31  ;;  %v1139_v43 = vadd.f32 %v1115_v55, %v1018_v22  ;;  %v1201_v22 = vmul.f32 %v4685_v21, %v1165_v1  ;;  %v4688_v55 = vld [vmem:[#allocation40_spill] sm:$0xff] }
 0x270   : > { %1787 = vrot.lane.b32.xlu0 %v1745_v56, %s2765_s21  ;;  %1499 = vrot.lane.b32.xlu1 %v1460_v23, %s2771_s24  ;;  %v1455_v56 = vmul.f32 %v4684_v33, %v3827_v18  ;;  %v1206_v23 = vmul.f32 %v4685_v21, %v1170_v36  ;;  %v1404_v36 = vsel %vm1402_vm3, %v3882_v31, %v1377_v41 }
 0x271   : > { %v1284_v4 = vadd.f32 %v1260_v58, %v1139_v43  ;;  %v1428_v31 = vadd.f32 %v1404_v36, %v1283_v5  ;;  %v1737_v43 = vmul.f32 %v4688_v55, %v1705_v11  ;;  %v1954_v5 = vmul.f32 %v3368_v17, %v3827_v18 }
 0x272   : > { %v3901_v44 = vpop.permute.xlu0 %1378  ;;  %v3903_v20 = vpop.permute.xlu1 %2014 }
 0x273   : > { %4682 = vst [vmem:[#allocation19_spill] sm:$0xff] %v3901_v44  ;;  %4683 = vst [vmem:[#allocation57_spill] sm:$0xff] %v3903_v20  ;;  %v1405_v24 = vsel %vm1402_vm3, %v1377_v41, %v3901_v44 }
 0x274   : > { %1489 = vrot.lane.b32.xlu0 %v1455_v56, %s2771_s24  ;;  %1245 = vrot.lane.b32.xlu1 %v1206_v23, %s2774_s19  ;;  %v1742_v56 = vmul.f32 %v4688_v55, %v1710_v6  ;;  %v4689_v23 = vld [vmem:[#allocation41_spill] sm:$0xff]  ;;  %v1429_v44 = vadd.f32 %v1405_v24, %v1284_v4  ;;  %v4691_v6 = vld [vmem:[#allocation42_spill] sm:$0xff]  ;;  %v1513_v24 = vsel %vm1511_vm4, %v3774_v39, %v3831_v37 }
 0x275   : > { %v904_v41 = vsel %vm858_vm10, %v4689_v23, %v3756_v49  ;;  %v1991_v58 = vmul.f32 %v4691_v6, %v1959_v38  ;;  %v1514_v49 = vsel %vm1511_vm4, %v3831_v37, %v3783_v50  ;;  %v1537_v38 = vadd.f32 %v1513_v24, %v1428_v31 }
 0x276   : > { %v3926_v59 = vpop.permute.xlu0 %1624  ;;  %v3928_v34 = vpop.permute.xlu1 %2018  ;;  %v3938_v40 = vsel %vm905_vm0, %v904_v41, 0.0  ;;  %v1538_v4 = vadd.f32 %v1514_v49, %v1429_v44  ;;  %v1986_v23 = vmul.f32 %v4691_v6, %v1954_v5  ;;  %v1904_v5 = vsel %vm1901_vm6, %v3794_v26, %v3853_v29 }
 0x277   : > { %4687 = vst [vmem:[#allocation21_spill] sm:$0xff] %v3926_v59  ;;  %v1654_v36 = vsel %vm1652_vm5, %v3926_v59, %v3855_v27  ;;  %v1066_v41 = vmul.f32 %v3295_v63, %v3938_v40  ;;  %v1061_v24 = vmul.f32 %v3269_v51, %v3874_v48 }
 0x278   : > { %1235 = vrot.lane.b32.xlu0 %v1201_v22, %s2774_s19  ;;  %1781 = vrot.lane.b32.xlu1 %v1742_v56, %s2765_s21  ;;  %v1678_v18 = vadd.f32 %v1654_v36, %v1537_v38 }
 0x27a   : > { %v3940_v14 = vpop.permute.xlu0 %1628  ;;  %v3942_v1 = vpop.permute.xlu1 %1094 }
 0x27b   : > { %4690 = vst [vmem:[#allocation36_spill] sm:$0xff] %v3942_v1  ;;  %v1655_v11 = vsel %vm1652_vm5, %v3855_v27, %v3940_v14 }
 0x27c   : > { %1771 = vrot.lane.b32.xlu0 %v1737_v43, %s2765_s21  ;;  %2030 = vrot.lane.b32.xlu1 %v1991_v58, %s2777_s7  ;;  %v1679_v22 = vadd.f32 %v1655_v11, %v1538_v4  ;;  %v1903_v58 = vsel %vm1901_vm6, %v3842_v47, %v3794_v26  ;;  %v1855_v4 = vmul.f32 %v3366_v16, %v3938_v40 }
 0x27e   : > { %v1768_v56 = vpop.permute.xlu0 %1767  ;;  %v3962_v37 = vpop.permute.xlu1 %1098 }
 0x27f   : > { %v1794_v27 = vsel %vm1724_vm14, %v3867_v42, %v1768_v56  ;;  %v1795_v31 = vsel %vm1724_vm14, %v1768_v56, %v3884_v52  ;;  %v4701_v42 = vld [vmem:[#allocation35_spill] sm:$0xff] }
 0x280   : > { %v1818_v44 = vadd.f32 %v1794_v27, %v1678_v18  ;;  %v1819_v43 = vadd.f32 %v1795_v31, %v1679_v22  ;;  %2020 = vrot.lane.b32.xlu0 %v1986_v23, %s2777_s7  ;;  %1110 = vrot.lane.b32.xlu1 %v1066_v41, %s2770_s6  ;;  %v1320_v18 = vmul.f32 %v3330_v32, %v3938_v40  ;;  %v4692_v31 = vld [vmem:[#allocation29_spill] sm:$0xff] }
 0x281   : > { %v1850_v41 = vmul.f32 %v3297_v0, %v3874_v48  ;;  %v1315_v27 = vmul.f32 %v3277_v54, %v3874_v48 }
 0x282   : > { %v2017_v49 = vpop.permute.xlu0 %2016  ;;  %v1927_v36 = vadd.f32 %v1903_v58, %v1818_v44  ;;  %v1928_v11 = vadd.f32 %v1904_v5, %v1819_v43  ;;  %v3982_v38 = vpop.permute.xlu1 %1495 }
 0x283   : > { %v2044_v22 = vsel %vm2042_vm7, %v3903_v20, %v2017_v49  ;;  %v2045_v26 = vsel %vm2042_vm7, %v2017_v49, %v3928_v34  ;;  %v1356_v49 = vmul.f32 %v3525_v35, %v1320_v18  ;;  %v1351_v18 = vmul.f32 %v3525_v35, %v1315_v27 }
 0x284   : > { %v2068_v56 = vadd.f32 %v2044_v22, %v1927_v36  ;;  %v2069_v23 = vadd.f32 %v2045_v26, %v1928_v11  ;;  %1100 = vrot.lane.b32.xlu0 %v1061_v24, %s2770_s6  ;;  %1899 = vrot.lane.b32.xlu1 %v1855_v4, %s2773_s9  ;;  %v1574_v24 = vmul.f32 %v3354_v9, %v3938_v40  ;;  %v896_v36 = vsel %vm895_vm8, 0.0, %v3792_v45  ;;  %v4693_v26 = vld [vmem:[#allocation32_spill] sm:$0xff] }
 0x285   : > { %v1569_v45 = vmul.f32 %v3283_v57, %v3874_v48 }
 0x286   : > { %v2098_v44 = vadd.f32 %v4692_v31, %v2068_v56  ;;  %v2099_v43 = vadd.f32 %v4692_v31, %v2069_v23  ;;  %v4000_v58 = vpop.permute.xlu0 %1096  ;;  %v4002_v5 = vpop.permute.xlu1 %1883  ;;  %v1606_v22 = vmul.f32 %v3610_v28, %v1574_v24  ;;  %v4025_v56 = vsel %vm858_vm10, %v896_v36, %v4693_v26 }
 0x287   : > { %v1052_v35 = vmul.f32 %v3291_v61, %v4025_v56  ;;  %v1306_v61 = vmul.f32 %v3321_v25, %v4025_v56  ;;  %v1560_v26 = vmul.f32 %v3352_v8, %v4025_v56  ;;  %v897_v25 = vsel %vm895_vm8, 0.0, %v3805_v10 }
 0x288   : > { %2110 = vst [vmem:[%s4009_s3 + $0x8] sm:$0xff] %v2098_v44  ;;  %2111 = vst [vmem:[%s4009_s3 + $0x10] sm:$0xff] %v2099_v43  ;;  %1889 = vrot.lane.b32.xlu0 %v1850_v41, %s2773_s9  ;;  %1400 = vrot.lane.b32.xlu1 %v1356_v49, %s2775_s5  ;;  %v1601_v44 = vmul.f32 %v3610_v28, %v1569_v45  ;;  %v1465_v43 = vmul.f32 %v3350_v7, %v3938_v40 }
 0x289   : > { %v1841_v49 = vmul.f32 %v3364_v15, %v4025_v56  ;;  %v1175_v28 = vmul.f32 %v3303_v3, %v3938_v40  ;;  %v1715_v15 = vmul.f32 %v3360_v13, %v3938_v40  ;;  %v4072_v8 = vsel %vm858_vm10, %v897_v25, %v3431_v53 }
 0x28a   : > { %v4015_v11 = vpop.permute.xlu0 %1493  ;;  %v4017_v4 = vpop.permute.xlu1 %1887  ;;  %v1451_v53 = vmul.f32 %v4684_v33, %v4025_v56  ;;  %v1119_v33 = vsel %vm1112_vm1, %v4000_v58, %v3962_v37 }
 0x28c   : > { %1390 = vrot.lane.b32.xlu0 %v1351_v18, %s2775_s5  ;;  %1650 = vrot.lane.b32.xlu1 %v1606_v22, %s2776_s22  ;;  %v1211_v18 = vmul.f32 %v4685_v21, %v1175_v28  ;;  %v4694_v22 = vld [vmem:[#allocation39_spill] sm:$0xff]  ;;  %v1592_v28 = vmul.f32 %v3565_v46, %v1560_v26  ;;  %v4698_v26 = vld [vmem:[#allocation20_spill] sm:$0xff] }
 0x28d   : > { %v1342_v45 = vmul.f32 %v4694_v22, %v1306_v61  ;;  %v1118_v61 = vsel %vm1112_vm1, %v3942_v1, %v4000_v58  ;;  %v1161_v25 = vmul.f32 %v4698_v26, %v4025_v56  ;;  %v4700_v1 = vld [vmem:[#allocation16_spill] sm:$0xff] }
 0x28e   : > { %v4029_v23 = vpop.permute.xlu0 %1497  ;;  %v1242_v41 = vpop.permute.xlu1 %1241 }
 0x28f   : > { %v1197_v59 = vmul.f32 %v4701_v42, %v1161_v25  ;;  %v1950_v25 = vmul.f32 %v3368_v17, %v4025_v56 }
 0x290   : > { %1640 = vrot.lane.b32.xlu0 %v1601_v44, %s2776_s22  ;;  %1082 = vrot.lane.b32.xlu1 %v1052_v35, %s2770_s6  ;;  %v4695_v44 = vld [vmem:[#allocation22_spill] sm:$0xff] }
 0x291   : > { %v1009_v35 = vmul.f32 %v4695_v44, %v3625_v30  ;;  %v1010_v30 = vmul.f32 %v4695_v44, %v3660_v19 }
 0x292   : > { %v4036_v48 = vpop.permute.xlu0 %1885  ;;  %v4038_v27 = vpop.permute.xlu1 %1384 }
 0x293   : > { %v1021_v10 = vmul.f32 %v4680_v12, %v1009_v35  ;;  %v4699_v35 = vld [vmem:[#allocation23_spill] sm:$0xff]  ;;  %v1022_v20 = vmul.f32 %v4700_v1, %v1010_v30 }
 0x294   : > { %1509 = vrot.lane.b32.xlu0 %v1465_v43, %s2771_s24  ;;  %1871 = vrot.lane.b32.xlu1 %v1841_v49, %s2773_s9  ;;  %v1747_v49 = vmul.f32 %v4688_v55, %v1715_v15  ;;  %v1166_v19 = vmul.f32 %v4699_v35, %v4072_v8 }
 0x295   : > { %v1143_v58 = vadd.f32 %v1119_v33, %v1022_v20  ;;  %v1955_v20 = vmul.f32 %v3301_v2, %v4072_v8  ;;  %v4704_v2 = vld [vmem:[#allocation43_spill] sm:$0xff] }
 0x296   : > { %v818_v24 = vpop.permute.xlu0 %817  ;;  %v4050_v36 = vpop.permute.xlu1 %1388 }
 0x297   : > { %v898_v33 = vsel %vm895_vm8, 0.0, %v818_v24  ;;  %v1518_v24 = vsel %vm1511_vm4, %v3982_v38, %v4029_v23 }
 0x298   : > { %1255 = vrot.lane.b32.xlu0 %v1211_v18, %s2774_s19  ;;  %1372 = vrot.lane.b32.xlu1 %v1342_v45, %s2775_s5  ;;  %v4697_v45 = vld [vmem:[#allocation24_spill] sm:$0xff] }
 0x299   : > { %v1456_v15 = vmul.f32 %v4697_v45, %v4072_v8  ;;  %v1701_v45 = vmul.f32 %v3289_v60, %v4025_v56 }
 0x29a   : > { %v4064_v43 = vpop.permute.xlu0 %1239  ;;  %v4066_v21 = vpop.permute.xlu1 %1634 }
 0x29b   : > { %4696 = vst [vmem:[#allocation40_spill] sm:$0xff] %v4064_v43 }
 0x29c   : > { %1791 = vrot.lane.b32.xlu0 %v1747_v49, %s2765_s21  ;;  %1622 = vrot.lane.b32.xlu1 %v1592_v28, %s2776_s22  ;;  %v1263_v49 = vsel %vm1257_vm2, %v4064_v43, %v1242_v41  ;;  %v1142_v28 = vadd.f32 %v1118_v61, %v1021_v10  ;;  %v1202_v10 = vmul.f32 %v4701_v42, %v1166_v19  ;;  %v4702_v61 = vld [vmem:[#allocation25_spill] sm:$0xff] }
 0x29e   : > { %v4082_v55 = vpop.permute.xlu0 %1243  ;;  %v4084_v18 = vpop.permute.xlu1 %1638  ;;  %v1287_v26 = vadd.f32 %v1263_v49, %v1142_v28 }
 0x29f   : > { %v1264_v30 = vsel %vm1257_vm2, %v1242_v41, %v4082_v55 }
 0x2a0   : > { %1481 = vrot.lane.b32.xlu0 %v1451_v53, %s2771_s24  ;;  %1491 = vrot.lane.b32.xlu1 %v1456_v15, %s2771_s24  ;;  %v1706_v53 = vmul.f32 %v4702_v61, %v4072_v8  ;;  %v1288_v19 = vadd.f32 %v1264_v30, %v1143_v58  ;;  %v4703_v61 = vld [vmem:[#allocation37_spill] sm:$0xff]  ;;  %v1987_v30 = vmul.f32 %v4704_v2, %v1955_v20 }
 0x2a1   : > { %v1733_v41 = vmul.f32 %v4703_v61, %v1701_v45  ;;  %v1057_v20 = vmul.f32 %v3269_v51, %v4072_v8  ;;  %v1311_v51 = vmul.f32 %v3277_v54, %v4072_v8  ;;  %v1908_v54 = vsel %vm1901_vm6, %v4036_v48, %v4017_v4 }
 0x2a2   : > { %v1387_v47 = vpop.permute.xlu0 %1386  ;;  %v1778_v35 = vpop.permute.xlu1 %1777  ;;  %v1738_v39 = vmul.f32 %v4703_v61, %v1706_v53  ;;  %v1982_v53 = vmul.f32 %v4704_v2, %v1950_v25 }
 0x2a3   : > { %v1408_v15 = vsel %vm1402_vm3, %v4038_v27, %v1387_v47  ;;  %v1409_v60 = vsel %vm1402_vm3, %v1387_v47, %v4050_v36 }
 0x2a4   : > { %v1432_v43 = vadd.f32 %v1408_v15, %v1287_v26  ;;  %1227 = vrot.lane.b32.xlu0 %v1197_v59, %s2774_s19  ;;  %1237 = vrot.lane.b32.xlu1 %v1202_v10, %s2774_s19  ;;  %v1517_v59 = vsel %vm1511_vm4, %v4015_v11, %v3982_v38  ;;  %v1433_v47 = vadd.f32 %v1409_v60, %v1288_v19 }
 0x2a6   : > { %v1637_v49 = vpop.permute.xlu0 %1636  ;;  %v2027_v28 = vpop.permute.xlu1 %2026  ;;  %v1541_v26 = vadd.f32 %v1517_v59, %v1432_v43  ;;  %v4705_v43 = vld [vmem:[#allocation38_spill] sm:$0xff]  ;;  %v1542_v58 = vadd.f32 %v1518_v24, %v1433_v47 }
 0x2a7   : > { %v1658_v17 = vsel %vm1652_vm5, %v4066_v21, %v1637_v49  ;;  %v4141_v15 = vsel %vm858_vm10, %v898_v33, %v4705_v43  ;;  %v1659_v25 = vsel %vm1652_vm5, %v1637_v49, %v4084_v18  ;;  %v1907_v49 = vsel %vm1901_vm6, %v4002_v5, %v4036_v48 }
 0x2a8   : > { %1763 = vrot.lane.b32.xlu0 %v1733_v41, %s2765_s21  ;;  %1773 = vrot.lane.b32.xlu1 %v1738_v39, %s2765_s21  ;;  %v1682_v60 = vadd.f32 %v1658_v17, %v1541_v26  ;;  %v1062_v59 = vmul.f32 %v3295_v63, %v4141_v15  ;;  %v1683_v47 = vadd.f32 %v1659_v25, %v1542_v58  ;;  %v4707_v58 = vld [vmem:[#allocation44_spill] sm:$0xff]  ;;  %v4709_v25 = vld [vmem:[#allocation31_spill] sm:$0xff] }
 0x2a9   : > { %v1846_v26 = vmul.f32 %v3297_v0, %v4072_v8  ;;  %v1316_v24 = vmul.f32 %v3330_v32, %v4141_v15  ;;  %v1565_v32 = vmul.f32 %v3283_v57, %v4072_v8  ;;  %v1570_v48 = vmul.f32 %v3354_v9, %v4141_v15  ;;  %v4710_v57 = vld [vmem:[#allocation46_spill] sm:$0xff] }
 0x2aa   : > { %v4130_v45 = vpop.permute.xlu0 %1775  ;;  %v4132_v10 = vpop.permute.xlu1 %1106 }
 0x2ab   : > { %v1798_v39 = vsel %vm1724_vm14, %v4130_v45, %v1778_v35  ;;  %v1597_v9 = vmul.f32 %v3565_v46, %v1565_v32  ;;  %v4711_v32 = vld [vmem:[#allocation47_spill] sm:$0xff] }
 0x2ac   : > { %2012 = vrot.lane.b32.xlu0 %v1982_v53, %s2777_s7  ;;  %2022 = vrot.lane.b32.xlu1 %v1987_v30, %s2777_s7  ;;  %v1822_v19 = vadd.f32 %v1798_v39, %v1682_v60  ;;  %v1851_v30 = vmul.f32 %v3366_v16, %v4141_v15  ;;  %v1347_v39 = vmul.f32 %v4694_v22, %v1311_v51  ;;  %v4708_v16 = vld [vmem:[#allocation28_spill] sm:$0xff] }
 0x2ad   : > { %v1013_v60 = vmul.f32 %v4708_v16, %v4707_v58  ;;  %v1014_v51 = vmul.f32 %v4708_v16, %v4710_v57  ;;  %v4715_v57 = vld [vmem:[#allocation26_spill] sm:$0xff] }
 0x2ae   : > { %v4149_v41 = vpop.permute.xlu0 %1779  ;;  %v4151_v38 = vpop.permute.xlu1 %1503  ;;  %v1931_v53 = vadd.f32 %v1907_v49, %v1822_v19 }
 0x2af   : > { %4706 = vst [vmem:[#allocation41_spill] sm:$0xff] %v4151_v38  ;;  %v1799_v33 = vsel %vm1724_vm14, %v1778_v35, %v4149_v41 }
 0x2b0   : > { %1092 = vrot.lane.b32.xlu0 %v1057_v20, %s2770_s6  ;;  %1102 = vrot.lane.b32.xlu1 %v1062_v59, %s2770_s6  ;;  %v1823_v17 = vadd.f32 %v1799_v33, %v1683_v47  ;;  %v1352_v47 = vmul.f32 %v4694_v22, %v1316_v24  ;;  %v1025_v22 = vmul.f32 %v4680_v12, %v1013_v60 }
 0x2b1   : > { %v1026_v12 = vmul.f32 %v4700_v1, %v1014_v51  ;;  %v1960_v51 = vmul.f32 %v4715_v57, %v4141_v15 }
 0x2b2   : > { %v4168_v63 = vpop.permute.xlu0 %2024  ;;  %v4170_v35 = vpop.permute.xlu1 %1507  ;;  %v1932_v59 = vadd.f32 %v1908_v54, %v1823_v17 }
 0x2b3   : > { %v2048_v43 = vsel %vm2042_vm7, %v4168_v63, %v2027_v28 }
 0x2b4   : > { %v2072_v0 = vadd.f32 %v2048_v43, %v1931_v53  ;;  %1881 = vrot.lane.b32.xlu0 %v1846_v26, %s2773_s9  ;;  %1891 = vrot.lane.b32.xlu1 %v1851_v30, %s2773_s9 }
 0x2b6   : > { %v2102_v19 = vadd.f32 %v4709_v25, %v2072_v0  ;;  %v4189_v20 = vpop.permute.xlu0 %2028  ;;  %v4191_v33 = vpop.permute.xlu1 %1895 }
 0x2b7   : > { %v2049_v49 = vsel %vm2042_vm7, %v2027_v28, %v4189_v20  ;;  %v1602_v28 = vmul.f32 %v3565_v46, %v1570_v48  ;;  %v1171_v46 = vmul.f32 %v3303_v3, %v4141_v15  ;;  %v4713_v48 = vld [vmem:[#allocation49_spill] sm:$0xff] }
 0x2b8   : > { %2114 = vst [vmem:[%s4009_s3 + $0x28] sm:$0xff] %v2102_v19  ;;  %v2073_v26 = vadd.f32 %v2049_v49, %v1932_v59  ;;  %1382 = vrot.lane.b32.xlu0 %v1347_v39, %s2775_s5  ;;  %1392 = vrot.lane.b32.xlu1 %v1352_v47, %s2775_s5  ;;  %v1461_v39 = vmul.f32 %v3350_v7, %v4141_v15  ;;  %v4712_v7 = vld [vmem:[#allocation48_spill] sm:$0xff] }
 0x2b9   : > { %v1207_v59 = vmul.f32 %v4701_v42, %v1171_v46 }
 0x2ba   : > { %v2103_v17 = vadd.f32 %v4709_v25, %v2073_v26  ;;  %v4204_v53 = vpop.permute.xlu0 %1104  ;;  %v4207_v30 = vpop.permute.xlu1 %1249 }
 0x2bb   : > { %v1122_v24 = vsel %vm1112_vm1, %v4204_v53, %v4132_v10 }
 0x2bc   : > { %2115 = vst [vmem:[%s4009_s3 + $0x30] sm:$0xff] %v2103_v17  ;;  %v1146_v43 = vadd.f32 %v1122_v24, %v1025_v22  ;;  %1632 = vrot.lane.b32.xlu0 %v1597_v9, %s2776_s22  ;;  %1642 = vrot.lane.b32.xlu1 %v1602_v28, %s2776_s22  ;;  %v1992_v9 = vmul.f32 %v4704_v2, %v1960_v51  ;;  %s2778_s22 = smov [#allocation7]  }
 0x2bd   : > { %v1964_v28 = vmul.f32 %v4715_v57, %v3938_v40 }
 0x2be   : > { %v4217_v0 = vpop.permute.xlu0 %1108  ;;  %v4220_v54 = vpop.permute.xlu1 %1253 }
 0x2bf   : > { %v1123_v58 = vsel %vm1112_vm1, %v4132_v10, %v4217_v0  ;;  %v1711_v10 = vmul.f32 %v3360_v13, %v4141_v15 }
 0x2c0   : > { %v1147_v60 = vadd.f32 %v1123_v58, %v1026_v12  ;;  %1501 = vrot.lane.b32.xlu0 %v1461_v39, %s2771_s24  ;;  %2034 = vrot.lane.b32.xlu1 %v4711_v32, %s2777_s7  ;;  %v1996_v32 = vmul.f32 %v4691_v6, %v1964_v28  ;;  %s2137_s24 = sshll.u32 %s4009_s3, 4  ;;  %s4438_s24 = int_to_ptr.vmem [resolvable:$true] %s2137_s24 }
 0x2c1   : > { %v1743_v42 = vmul.f32 %v4703_v61, %v1711_v10  ;;  %s2623_s5 = scalar_lea.vmem %s4438_s24, 1536 }
 0x2c2   : > { %v1506_v19 = vpop.permute.xlu0 %1505  ;;  %v1397_v1 = vpop.permute.xlu1 %1396  ;;  %p2624_p11 = scmp.ne.s32.totalorder %s4438_s24, %s2623_s5 }
 0x2c3   : > { %v1521_v40 = vsel %vm1511_vm4, %v4151_v38, %v1506_v19  ;;  %v1522_v6 = vsel %vm1511_vm4, %v1506_v19, %v4170_v35 }
 0x2c4   : > { %1247 = vrot.lane.b32.xlu0 %v1207_v59, %s2774_s19  ;;  %2038 = vrot.lane.b32.xlu1 %v4712_v7, %s2777_s7  ;;  %s4741_s19 = sld [smem:[#allocation64_spill]]  ;;  %p2625_p5 = pnand %p2624_p11, %p4742_p3 }
 0x2c6   : > { %v4236_v3 = vpop.permute.xlu0 %1893  ;;  %v1647_v47 = vpop.permute.xlu1 %1646  ;;  %p2626_p7 = pneg %p2625_p5 }
 0x2c8   : > { %2036 = vrot.lane.b32.xlu0 %v4713_v48, %s2777_s7 }
 0x2ca   : > { %v4242_v49 = vpop.permute.xlu0 %1897  ;;  %v4244_v26 = vpop.permute.xlu1 %1785 }
 0x2cb   : > { %4714 = vst [vmem:[#allocation42_spill] sm:$0xff] %v4244_v26  ;;  %v1912_v17 = vsel %vm1901_vm6, %v4191_v33, %v4242_v49 }
 0x2cc   : > { %1783 = vrot.lane.b32.xlu0 %v1743_v42, %s2765_s21  ;;  %s2359_s21 = smul.u32 24, %s4623_s27 }
 0x2ce   : > { %v1252_v22 = vpop.permute.xlu0 %1251  ;;  %v4253_v13 = vpop.permute.xlu1 %1789  ;;  %s2134_s27 = sadd.s32 %s2359_s21, %s2326_s15  ;;  %s2122_s15 = scalar_lea.sflag [#allocation4], %s3066_s8 }
 0x2cf   : > { %v1267_v61 = vsel %vm1257_vm2, %v4207_v30, %v1252_v22  ;;  %v1268_v24 = vsel %vm1257_vm2, %v1252_v22, %v4220_v54  ;;  %s2319_s6 = sshll.u32 %s2134_s27, 7 }
 0x2d0   : > { %v1291_v12 = vadd.f32 %v1267_v61, %v1146_v43  ;;  %v1292_v39 = vadd.f32 %v1268_v24, %v1147_v60  ;;  %2032 = vrot.lane.b32.xlu0 %v1992_v9, %s2777_s7  ;;  %s4434_s30 = scalar_lea.hbm %s4741_s19, %s2319_s6 }
 0x2d2   : > { %v4263_v46 = vpop.permute.xlu0 %1394  ;;  %v1091_v58 = vpop.permute.xlu1 %1090 }
 0x2d3   : > { %4716 = vst [vmem:[#allocation29_spill] sm:$0xff] %v4263_v46  ;;  %v1412_v2 = vsel %vm1402_vm3, %v4263_v46, %v1397_v1 }
 0x2d4   : > { %v1436_v59 = vadd.f32 %v1412_v2, %v1291_v12  ;;  %2040 = vrot.lane.b32.xlu0 %v1996_v32, %s2777_s7  ;;  %v4718_v2 = vld [vmem:[#allocation34_spill] sm:$0xff]  ;;  %s2627_s7 = sshll.u32 %s2778_s22, 4  ;;  %s2628_s7 = int_to_ptr.vmem [resolvable:$false] %s2627_s7 }
 0x2d5   : > { %s2629_s2 = scalar_lea.vmem %s2628_s7, 3072  ;;  %p2630_p0 = scmp.lt.s32.totalorder %s4438_s24, %s2628_s7 }
 0x2d6   : > { %v4271_v7 = vpop.permute.xlu0 %1398  ;;  %v1880_v43 = vpop.permute.xlu1 %1879  ;;  %v1545_v60 = vadd.f32 %v1521_v40, %v1436_v59  ;;  %v4719_v59 = vld [vmem:[#allocation27_spill] sm:$0xff]  ;;  %p2631_p1 = scmp.lt.s32.totalorder %s2629_s2, %s2623_s5 }
 0x2d7   : > { %v1413_v10 = vsel %vm1402_vm3, %v1397_v1, %v4271_v7  ;;  %v1007_v40 = vmul.f32 %v4719_v59, %v4718_v2 }
 0x2d8   : > { %v1437_v48 = vadd.f32 %v1413_v10, %v1292_v39  ;;  %p2632_p6 = por %p2631_p1, %p2630_p0 }
 0x2da   : > { %v4277_v42 = vpop.permute.xlu0 %1644  ;;  %v1381_v57 = vpop.permute.xlu1 %1380  ;;  %v1546_v51 = vadd.f32 %v1522_v6, %v1437_v48  ;;  %v1911_v48 = vsel %vm1901_vm6, %v4236_v3, %v4191_v33  ;;  %p2633_p4 = pnand %p2632_p6, %p2626_p7 }
 0x2db   : > { %4717 = vst [vmem:[#allocation32_spill] sm:$0xff] %v4277_v42  ;;  %v1662_v22 = vsel %vm1652_vm5, %v4277_v42, %v1647_v47  ;;  %v4721_v42 = vld [vmem:[#allocation17_spill] sm:$0xff] }
 0x2dc   : > { %v1686_v9 = vadd.f32 %v1662_v22, %v1545_v60 }
 0x2de   : > { %v4281_v28 = vpop.permute.xlu0 %1648  ;;  %v1631_v61 = vpop.permute.xlu1 %1630 }
 0x2df   : > { %v1663_v24 = vsel %vm1652_vm5, %v1647_v47, %v4281_v28 }
 0x2e0   : > { %v1687_v12 = vadd.f32 %v1663_v24, %v1546_v51  ;;  %v4720_v24 = vld [vmem:[#allocation53_spill] sm:$0xff] }
 0x2e2   : > { %v1788_v1 = vpop.permute.xlu0 %1787  ;;  %v1500_v39 = vpop.permute.xlu1 %1499 }
 0x2e3   : > { %v1802_v19 = vsel %vm1724_vm14, %v4244_v26, %v1788_v1  ;;  %v1803_v32 = vsel %vm1724_vm14, %v1788_v1, %v4253_v13  ;;  %v1116_v26 = vsel %vm1112_vm1, %v4720_v24, %v1091_v58  ;;  %v1019_v1 = vmul.f32 %v4721_v42, %v1007_v40 }
 0x2e4   : > { %v1826_v10 = vadd.f32 %v1802_v19, %v1686_v9  ;;  %v1827_v60 = vadd.f32 %v1803_v32, %v1687_v12  ;;  %v4722_v19 = vld [vmem:[#allocation19_spill] sm:$0xff] }
 0x2e5   : > { %v1140_v38 = vadd.f32 %v1116_v26, %v1019_v1  ;;  %v1406_v33 = vsel %vm1402_vm3, %v4722_v19, %v1381_v57  ;;  %v1656_v26 = vsel %vm1652_vm5, %v3940_v14, %v1631_v61  ;;  %v4724_v19 = vld [vmem:[#allocation50_spill] sm:$0xff]  ;;  %v1905_v14 = vsel %vm1901_vm6, %v3853_v29, %v1880_v43 }
 0x2e6   : > { %v1490_v6 = vpop.permute.xlu0 %1489  ;;  %v1246_v47 = vpop.permute.xlu1 %1245  ;;  %v4294_v51 = vadd.f32 %v1911_v48, %v1826_v10  ;;  %v4296_v22 = vadd.f32 %v1912_v17, %v1827_v60  ;;  %v4723_v17 = vld [vmem:[#allocation45_spill] sm:$0xff] }
 0x2e7   : > { %v1015_v60 = vmul.f32 %v4708_v16, %v4723_v17  ;;  %v1515_v58 = vsel %vm1511_vm4, %v3783_v50, %v1490_v6  ;;  %v1011_v50 = vmul.f32 %v4695_v44, %v4724_v19  ;;  %v1265_v43 = vsel %vm1257_vm2, %v4082_v55, %v1246_v47 }
 0x2e9   : > { %v1023_v17 = vmul.f32 %v4721_v42, %v1011_v50 }
 0x2ea   : > { %v1236_v46 = vpop.permute.xlu0 %1235  ;;  %v1782_v2 = vpop.permute.xlu1 %1781 }
 0x2eb   : > { %v1261_v9 = vsel %vm1257_vm2, %v3833_v62, %v1236_v46  ;;  %v1027_v62 = vmul.f32 %v4721_v42, %v1015_v60  ;;  %v1800_v55 = vsel %vm1724_vm14, %v4149_v41, %v1782_v2 }
 0x2ec   : > { %v1285_v12 = vadd.f32 %v1261_v9, %v1140_v38 }
 0x2ee   : > { %v1430_v32 = vadd.f32 %v1406_v33, %v1285_v12  ;;  %v1772_v10 = vpop.permute.xlu0 %1771  ;;  %v2031_v48 = vpop.permute.xlu1 %2030 }
 0x2ef   : > { %v1796_v46 = vsel %vm1724_vm14, %v3884_v52, %v1772_v10 }
 0x2f0   : > { %v1539_v40 = vadd.f32 %v1515_v58, %v1430_v32 }
 0x2f2   : > { %v1680_v24 = vadd.f32 %v1656_v26, %v1539_v40  ;;  %v2021_v1 = vpop.permute.xlu0 %2020  ;;  %v1111_v38 = vpop.permute.xlu1 %1110 }
 0x2f3   : > { %v1124_v57 = vsel %vm1112_vm1, %v4217_v0, %v1111_v38  ;;  %v2046_v32 = vsel %vm2042_vm7, %v3928_v34, %v2021_v1 }
 0x2f4   : > { %v1820_v9 = vadd.f32 %v1796_v46, %v1680_v24  ;;  %v1148_v12 = vadd.f32 %v1124_v57, %v1027_v62 }
 0x2f6   : > { %v1929_v61 = vadd.f32 %v1905_v14, %v1820_v9  ;;  %v1101_v6 = vpop.permute.xlu0 %1100  ;;  %v1900_v33 = vpop.permute.xlu1 %1899 }
 0x2f7   : > { %v1120_v52 = vsel %vm1112_vm1, %v3962_v37, %v1101_v6  ;;  %v1913_v0 = vsel %vm1901_vm6, %v4242_v49, %v1900_v33  ;;  %v1519_v49 = vsel %vm1511_vm4, %v4029_v23, %v1500_v39  ;;  %v2050_v23 = vsel %vm2042_vm7, %v4189_v20, %v2031_v48 }
 0x2f8   : > { %v2070_v10 = vadd.f32 %v2046_v32, %v1929_v61  ;;  %v1144_v58 = vadd.f32 %v1120_v52, %v1023_v17  ;;  %v1004_v20 = vmul.f32 %v4719_v59, %v4025_v56  ;;  %v4727_v59 = vld [vmem:[#allocation54_spill] sm:$0xff] }
 0x2fa   : > { %v2100_v60 = vadd.f32 %v4692_v31, %v2070_v10  ;;  %v1890_v40 = vpop.permute.xlu0 %1889  ;;  %v1401_v29 = vpop.permute.xlu1 %1400  ;;  %v1289_v34 = vadd.f32 %v1265_v43, %v1144_v58 }
 0x2fb   : > { %v1414_v41 = vsel %vm1402_vm3, %v4271_v7, %v1401_v29 }
 0x2fc   : > { %2112 = vst [vmem:[%s4009_s3 + $0x18] sm:$0xff] %v2100_v60  ;;  %v4725_v60 = vld [vmem:[#allocation52_spill] sm:$0xff] }
 0x2fe   : > { %v1391_v26 = vpop.permute.xlu0 %1390  ;;  %v1651_v24 = vpop.permute.xlu1 %1650 }
 0x2ff   : > { %v1410_v37 = vsel %vm1402_vm3, %v4050_v36, %v1391_v26  ;;  %v1909_v36 = vsel %vm1901_vm6, %v4017_v4, %v1890_v40  ;;  %v4726_v40 = vld [vmem:[#allocation18_spill] sm:$0xff] }
 0x300   : > { %v1434_v1 = vadd.f32 %v1410_v37, %v1289_v34  ;;  %v1016_v29 = vmul.f32 %v4726_v40, %v1004_v20  ;;  %v4728_v37 = vld [vmem:[#allocation33_spill] sm:$0xff] }
 0x302   : > { %v1641_v42 = vpop.permute.xlu0 %1640  ;;  %v1543_v62 = vadd.f32 %v1519_v49, %v1434_v1  ;;  %v1083_v38 = vpop.permute.xlu1 %1082 }
 0x303   : > { %v1660_v46 = vsel %vm1652_vm5, %v4084_v18, %v1641_v42  ;;  %v1113_v7 = vsel %vm1112_vm1, %v1083_v38, %v4725_v60  ;;  %v4729_v38 = vld [vmem:[#allocation51_spill] sm:$0xff] }
 0x304   : > { %v1684_v57 = vadd.f32 %v1660_v46, %v1543_v62 }
 0x306   : > { %v1824_v47 = vadd.f32 %v1800_v55, %v1684_v57  ;;  %v1510_v9 = vpop.permute.xlu0 %1509  ;;  %v1872_v19 = vpop.permute.xlu1 %1871  ;;  %v4730_v57 = vld [vmem:[#allocation21_spill] sm:$0xff] }
 0x307   : > { %v1523_v52 = vsel %vm1511_vm4, %v4170_v35, %v1510_v9  ;;  %v1137_v35 = vadd.f32 %v1113_v7, %v1016_v29 }
 0x308   : > { %v1933_v50 = vadd.f32 %v1909_v36, %v1824_v47  ;;  %v4731_v36 = vld [vmem:[#allocation56_spill] sm:$0xff] }
 0x30a   : > { %v2074_v39 = vadd.f32 %v2050_v23, %v1933_v50  ;;  %v1256_v14 = vpop.permute.xlu0 %1255  ;;  %v1373_v61 = vpop.permute.xlu1 %1372 }
 0x30b   : > { %v1269_v18 = vsel %vm1257_vm2, %v4220_v54, %v1256_v14  ;;  %v1664_v54 = vsel %vm1652_vm5, %v4281_v28, %v1651_v24  ;;  %v1403_v1 = vsel %vm1402_vm3, %v1373_v61, %v4728_v37  ;;  %v4732_v14 = vld [vmem:[#allocation55_spill] sm:$0xff] }
 0x30c   : > { %v2104_v6 = vadd.f32 %v4709_v25, %v2074_v39  ;;  %v1293_v33 = vadd.f32 %v1269_v18, %v1148_v12  ;;  %v1008_v39 = vmul.f32 %v4695_v44, %v4072_v8  ;;  %v1902_v61 = vsel %vm1901_vm6, %v1872_v19, %v4732_v14  ;;  %v4735_v8 = vld [vmem:[#allocation40_spill] sm:$0xff] }
 0x30e   : > { %2116 = vst [vmem:[%s4009_s3 + $0x38] sm:$0xff] %v2104_v6  ;;  %v1438_v2 = vadd.f32 %v1414_v41, %v1293_v33  ;;  %v1792_v32 = vpop.permute.xlu0 %1791  ;;  %v1623_v4 = vpop.permute.xlu1 %1622  ;;  %v4733_v41 = vld [vmem:[#allocation57_spill] sm:$0xff]  ;;  %v1020_v20 = vmul.f32 %v4726_v40, %v1008_v39 }
 0x30f   : > { %v1804_v58 = vsel %vm1724_vm14, %v4253_v13, %v1792_v32  ;;  %v1653_v55 = vsel %vm1652_vm5, %v1623_v4, %v4730_v57  ;;  %v4734_v32 = vld [vmem:[#allocation36_spill] sm:$0xff] }
 0x310   : > { %v1547_v48 = vadd.f32 %v1523_v52, %v1438_v2 }
 0x312   : > { %v1688_v10 = vadd.f32 %v1664_v54, %v1547_v48  ;;  %v1482_v17 = vpop.permute.xlu0 %1481  ;;  %v1492_v12 = vpop.permute.xlu1 %1491 }
 0x313   : > { %v1512_v13 = vsel %vm1511_vm4, %v1482_v17, %v4729_v38 }
 0x314   : > { %v1828_v43 = vadd.f32 %v1804_v58, %v1688_v10 }
 0x316   : > { %v1228_v26 = vpop.permute.xlu0 %1227  ;;  %v1238_v34 = vpop.permute.xlu1 %1237  ;;  %v4360_v56 = vadd.f32 %v1913_v0, %v1828_v43  ;;  %v1516_v43 = vsel %vm1511_vm4, %v1492_v12, %v4015_v11 }
 0x317   : > { %v1258_v28 = vsel %vm1257_vm2, %v1228_v26, %v4727_v59  ;;  %v1262_v19 = vsel %vm1257_vm2, %v1238_v34, %v4735_v8 }
 0x318   : > { %v1282_v24 = vadd.f32 %v1258_v28, %v1137_v35  ;;  %v1012_v28 = vmul.f32 %v4708_v16, %v4141_v15 }
 0x31a   : > { %v1427_v49 = vadd.f32 %v1403_v1, %v1282_v24  ;;  %v1764_v42 = vpop.permute.xlu0 %1763  ;;  %v1774_v62 = vpop.permute.xlu1 %1773  ;;  %v1024_v12 = vmul.f32 %v4726_v40, %v1012_v28 }
 0x31b   : > { %v1793_v50 = vsel %vm1724_vm14, %v1764_v42, %v4731_v36  ;;  %v1797_v24 = vsel %vm1724_vm14, %v1774_v62, %v4130_v45  ;;  %v4738_v36 = vld [vmem:[#allocation32_spill] sm:$0xff] }
 0x31c   : > { %v1536_v46 = vadd.f32 %v1512_v13, %v1427_v49  ;;  %v4736_v13 = vld [vmem:[#allocation29_spill] sm:$0xff] }
 0x31e   : > { %v1677_v47 = vadd.f32 %v1653_v55, %v1536_v46  ;;  %v2013_v0 = vpop.permute.xlu0 %2012  ;;  %v2023_v9 = vpop.permute.xlu1 %2022 }
 0x31f   : > { %v2043_v2 = vsel %vm2042_vm7, %v2013_v0, %v4733_v41  ;;  %v2047_v15 = vsel %vm2042_vm7, %v2023_v9, %v4168_v63  ;;  %v4737_v63 = vld [vmem:[#allocation41_spill] sm:$0xff] }
 0x320   : > { %v1817_v23 = vadd.f32 %v1793_v50, %v1677_v47 }
 0x322   : > { %v1926_v18 = vadd.f32 %v1902_v61, %v1817_v23  ;;  %v1093_v6 = vpop.permute.xlu0 %1092  ;;  %v1103_v33 = vpop.permute.xlu1 %1102  ;;  %v4739_v23 = vld [vmem:[#allocation30_spill] sm:$0xff] }
 0x323   : > { %v1117_v4 = vsel %vm1112_vm1, %v1093_v6, %v4734_v32  ;;  %v1121_v1 = vsel %vm1112_vm1, %v1103_v33, %v4204_v53  ;;  %v4740_v6 = vld [vmem:[#allocation42_spill] sm:$0xff] }
 0x324   : > { %v2067_v52 = vadd.f32 %v2043_v2, %v1926_v18  ;;  %v1141_v54 = vadd.f32 %v1117_v4, %v1020_v20  ;;  %v1145_v16 = vadd.f32 %v1121_v1, %v1024_v12 }
 0x326   : > { %v2097_v48 = vadd.f32 %v4692_v31, %v2067_v52  ;;  %v1882_v10 = vpop.permute.xlu0 %1881  ;;  %v1892_v44 = vpop.permute.xlu1 %1891  ;;  %v1286_v60 = vadd.f32 %v1262_v19, %v1141_v54 }
 0x327   : > { %v1906_v11 = vsel %vm1901_vm6, %v1882_v10, %v4002_v5 }
 0x328   : > { %2109 = vst [vmem:[%s4009_s3] sm:$0xff] %v2097_v48 }
 0x32a   : > { %v1383_v17 = vpop.permute.xlu0 %1382  ;;  %v1393_v7 = vpop.permute.xlu1 %1392 }
 0x32b   : > { %v1407_v58 = vsel %vm1402_vm3, %v1383_v17, %v4038_v27  ;;  %v1411_v5 = vsel %vm1402_vm3, %v1393_v7, %v4736_v13 }
 0x32c   : > { %v1431_v29 = vadd.f32 %v1407_v58, %v1286_v60 }
 0x32e   : > { %v1633_v35 = vpop.permute.xlu0 %1632  ;;  %v1540_v26 = vadd.f32 %v1516_v43, %v1431_v29  ;;  %v1643_v31 = vpop.permute.xlu1 %1642 }
 0x32f   : > { %v1657_v59 = vsel %vm1652_vm5, %v1633_v35, %v4066_v21  ;;  %v1661_v50 = vsel %vm1652_vm5, %v1643_v31, %v4738_v36 }
 0x330   : > { %v1681_v34 = vadd.f32 %v1657_v59, %v1540_v26 }
 0x332   : > { %v1821_v37 = vadd.f32 %v1797_v24, %v1681_v34  ;;  %v1502_v27 = vpop.permute.xlu0 %1501  ;;  %v2035_v21 = vpop.permute.xlu1 %2034 }
 0x333   : > { %v1520_v55 = vsel %vm1511_vm4, %v1502_v27, %v4737_v63 }
 0x334   : > { %v1930_v49 = vadd.f32 %v1906_v11, %v1821_v37 }
 0x336   : > { %v2071_v42 = vadd.f32 %v2047_v15, %v1930_v49  ;;  %v1248_v38 = vpop.permute.xlu0 %1247  ;;  %v2039_v46 = vpop.permute.xlu1 %2038 }
 0x337   : > { %v1266_v45 = vsel %vm1257_vm2, %v1248_v38, %v4207_v30 }
 0x338   : > { %v2101_v62 = vadd.f32 %v4709_v25, %v2071_v42  ;;  %v1290_v53 = vadd.f32 %v1266_v45, %v1145_v16 }
 0x33a   : > { %2113 = vst [vmem:[%s4009_s3 + $0x20] sm:$0xff] %v2101_v62  ;;  %v1435_v40 = vadd.f32 %v1411_v5, %v1290_v53  ;;  %v2037_v57 = vpop.permute.xlu0 %2036 }
 0x33b   : > { %v2052_v47 = vsel %vm2042_vm7, %v2035_v21, %v2037_v57  ;;  %v2053_v30 = vsel %vm2042_vm7, %v2037_v57, %v2039_v46 }
 0x33c   : > { %v2076_v25 = vadd.f32 %v2052_v47, %v4294_v51  ;;  %v2077_v0 = vadd.f32 %v2053_v30, %v4296_v22  ;;  %v1544_v9 = vadd.f32 %v1520_v55, %v1435_v40  ;;  %v1910_v22 = vsel %vm1901_vm6, %v1892_v44, %v4236_v3 }
 0x33e   : > { %v2106_v39 = vadd.f32 %v4739_v23, %v2076_v25  ;;  %v2107_v14 = vadd.f32 %v4739_v23, %v2077_v0  ;;  %v1784_v61 = vpop.permute.xlu0 %1783  ;;  %v1685_v18 = vadd.f32 %v1661_v50, %v1544_v9 }
 0x33f   : > { %v1801_v33 = vsel %vm1724_vm14, %v1784_v61, %v4740_v6 }
 0x340   : > { %2118 = vst [vmem:[%s4009_s3 + $0x48] sm:$0xff] %v2106_v39  ;;  %2119 = vst [vmem:[%s4009_s3 + $0x50] sm:$0xff] %v2107_v14  ;;  %v1825_v51 = vadd.f32 %v1801_v33, %v1685_v18 }
 0x342   : > { %v2033_v41 = vpop.permute.xlu0 %2032  ;;  %v1934_v2 = vadd.f32 %v1910_v22, %v1825_v51 }
 0x343   : > { %v2051_v32 = vsel %vm2042_vm7, %v2033_v41, %v2035_v21 }
 0x344   : > { %v2075_v4 = vadd.f32 %v2051_v32, %v1934_v2 }
 0x346   : > { %v2105_v52 = vadd.f32 %v4739_v23, %v2075_v4  ;;  %v2041_v20 = vpop.permute.xlu0 %2040 }
 0x347   : > { %v2054_v48 = vsel %vm2042_vm7, %v2039_v46, %v2041_v20 }
 0x348   : > { %2117 = vst [vmem:[%s4009_s3 + $0x40] sm:$0xff] %v2105_v52  ;;  %v2078_v3 = vadd.f32 %v2054_v48, %v4360_v56 }
 0x34a   : > { %v2108_v54 = vadd.f32 %v4739_v23, %v2078_v3 }
 0x34c   : > { %2120 = vst [vmem:[%s4009_s3 + $0x58] sm:$0xff] %v2108_v54 }
 0x34d   : > { %2636 = shalt.err (!%p2633_p4)
}
 0x34e   : > { %s2637_s3 = scalar_lea.hbm %s4434_s30, 1536  ;;  %s2641_s6 = scalar_lea.hbm %s4741_s19, 6144 }
 0x34f   : > { %p2638_p8 = scmp.ne.s32.totalorder %s4434_s30, %s2637_s3  ;;  %p2642_p12 = scmp.lt.u32.totalorder %s4434_s30, %s4741_s19 }
 0x350   : > { %p2643_p13 = scmp.lt.u32.totalorder %s2641_s6, %s2637_s3  ;;  %p2645_p11 = scmp.lt.u32.totalorder %s2637_s3, %s4434_s30 }
 0x351   : > { %p2639_p9 = pnand %p2638_p8, %p4742_p3 }
 0x352   : > { %p2644_p10 = por %p2643_p13, %p2642_p12 }
 0x353   : > { %p2640_p2 = pneg %p2639_p9 }
 0x354   : > { %p2646_p5 = por %p2645_p11, %p2644_p10 }
 0x356   : > { %p2647_p7 = pnand %p2646_p5, %p2640_p2 }
 0x358   : > { %2650 = shalt.err (!%p2647_p7)
}
 0x359   : > { %s2779_s5 = smov 512   ;;  %s2780_s22 = smov 1024  }
 0x35a   : > { %2364 = dma.vmem_to_hbm [thread:$0]  (%p4742_p3), %s4438_s24, 1536, %s4434_s30, %s2122_s15, %s2779_s5, %s2780_s22, %s2756_s13  }
 0x35b PF: > { %s4743_s7 = sld [smem:[#allocation11_spill]]  ;;  %p2378_p0 = scmp.ge.s32.totalorder %s2749_s11, 2 }
 0x35c   : > { %p4744_p1 = scmp.ne.s32.totalorder %s4606_s16, 0 }
 0x35e   : > { %p2374_p6 = pnand %p2378_p0, %p4744_p1 }
 0x361   : > { %s2152_s2 = sand.u32 1, %s4743_s7  }
 0x362   : > { %s2153_s3 = scalar_lea.sflag [#allocation4], %s2152_s2 }
 0x363   : > { %2704 = dma.done.wait (!%p2374_p6), %s2153_s3, 1536  }
 0x364   : > { %2706 = vsyncadd (!%p2374_p6), %s2153_s3, 4294965760  ;;  %s26_s11 = sadd.s32 1, %s2749_s11   ;;  %s4745_s30 = sld [smem:[#allocation13_spill]] }
 0x365   : > { %p23_p4 = scmp.ge.s32.totalorder %s26_s11, 6   ;;  %s4746_s9 = sld [smem:[#allocation14_spill]] }
 0x366   : > { %s4747_s23 = sld [smem:[#allocation15_spill]]  ;;  %s4748_s24 = smov %s2713_s25 }
 0x367   : > { %s4749_s25 = smov %s2717_s26  ;;  %s4750_s26 = smov %s3019_s17 }
 0x368   : > { %s4751_s27 = smov %s2725_s28  ;;  %s4752_s28 = smov %s2729_s29 }
 0x369   : > { %s4753_s29 = smov %s3001_s20  ;;  %s4754_s8 = smov %s2745_s10 }
 0x36a   :  { %25 = sbr.rel (!%p23_p4) target bundleno = 19 (0x13), region = 109 }
 0x36c   : > { %s4755_s10 = smov %s4747_s23 }
 0x371   :  { %2158 = vsyncpa [#allocation3], 1 }
 0x372   :  { %2160 = vsyncpa [#allocation3 + $0x1], 1 }
 0x373   :  { %2161 = vsyncpa [#allocation6], 1 }
 0x374   :  { %2163 = vsyncpa [#allocation6 + $0x1], 1 }
 0x375   :  { %2164 = vsyncpa [#allocation4], 1 }
 0x376   :  { %2166 = vsyncpa [#allocation4 + $0x1], 1 }

</bundles_post_ra>
